<compile_context>
chip_gen: v7x
topology: tpu7x:2x2x1
jax: 0.10.0
libtpu: 0.0.40
codegen_flags: <defaults>
</compile_context>

<pallas_src>
import functools

import jax
import jax.numpy as jnp
from jax import lax
from jax.experimental import pallas as pl
from jax.experimental.pallas import tpu as pltpu

# ---------------------------------------------------------------------------
# Config (mirrors cfg['variance'] and the constructor args of MultiBoxLoss)
# ---------------------------------------------------------------------------
NUM_CLASSES = 4
OVERLAP_THRESH = 0.5
NEGPOS_RATIO = 3
VARIANCE = (0.1, 0.2)
MASK_SIZES = (50, 25, 13)          # hard-coded in generate_mask()
MAX_TILE_R = 2048                  # lane-dense rows per grid step (multiple of 128)


def _pick_tile(r, max_tile=MAX_TILE_R):
    """Choose a 128-multiple lane tile and the padded row count it divides."""
    r128 = ((r + 127) // 128) * 128
    tile = min(max_tile, r128)
    r_pad = ((r128 + tile - 1) // tile) * tile
    return tile, r_pad


# ---------------------------------------------------------------------------
# Pallas kernels (lane-dense: rows on lanes, classes/coords on sublanes)
# ---------------------------------------------------------------------------
def _ce_sum_kernel(total_rows, tile_r,
                   logits_ref, labels_ref, sum_ref, acc_ref):
    """Sum of per-row CE over the first `total_rows` rows.
    logits (C, T) f32, labels (1, T) i32 -> scalar sum (1, 1)."""
    @pl.when(pl.program_id(0) == 0)
    def _():
        acc_ref[...] = jnp.zeros_like(acc_ref)

    logits = logits_ref[...]                                   # (C, T)
    m = jnp.max(logits, axis=0, keepdims=True)                 # (1, T)
    lse = m + jnp.log(jnp.sum(jnp.exp(logits - m), axis=0, keepdims=True))
    lbl = labels_ref[...]                                      # (1, T) i32
    # chained select instead of one-hot multiply-reduce (C is small & static)
    picked = logits[0:1, :]
    for k in range(1, logits.shape[0]):
        picked = jnp.where(lbl == k, logits[k:k + 1, :], picked)
    # validity computed in-kernel (no extra input stream / DMA)
    lane = lax.broadcasted_iota(jnp.int32, lse.shape, 1)
    row = pl.program_id(0) * tile_r + lane
    valid = (row < total_rows).astype(jnp.float32)
    acc_ref[...] += jnp.sum((lse - picked) * valid, axis=(0, 1), keepdims=True)

    @pl.when(pl.program_id(0) == pl.num_programs(0) - 1)
    def _():
        sum_ref[...] = acc_ref[...]


def masked_ce_mean(logits_cr, labels_r, n_valid):
    """Mean CE over the R valid rows.  logits_cr (C, R), labels_r (R,)."""
    C, R = logits_cr.shape
    tile_r, r_pad = _pick_tile(R)
    pad = r_pad - R
    logits_p = jnp.pad(logits_cr.astype(jnp.float32), ((0, 0), (0, pad)))
    labels_p = jnp.pad(labels_r.reshape(1, R).astype(jnp.int32), ((0, 0), (0, pad)))
    s = pl.pallas_call(
        functools.partial(_ce_sum_kernel, R, tile_r),
        out_shape=jax.ShapeDtypeStruct((1, 1), jnp.float32),
        grid=(r_pad // tile_r,),
        in_specs=[
            pl.BlockSpec((C, tile_r), lambda i: (0, i)),
            pl.BlockSpec((1, tile_r), lambda i: (0, i)),
        ],
        out_specs=pl.BlockSpec((1, 1), lambda i: (0, 0)),
        scratch_shapes=[pltpu.VMEM((1, 1), jnp.float32)],
        compiler_params=pltpu.CompilerParams(
            dimension_semantics=("arbitrary",)),   # scalar accumulator -> arbitrary
    )(logits_p, labels_p)
    return s[0, 0] / n_valid


def _prior_loss_kernel(conf_ref, labels_ref, pos_ref, locp_ref, loct_ref,
                       ce_ref, l1_ref, acc_ref):
    """Fused per-prior kernel: per-row conf CE (for mining) + masked smooth-L1 sum."""
    @pl.when(pl.program_id(0) == 0)
    def _():
        acc_ref[...] = jnp.zeros_like(acc_ref)

    # ---- confidence cross entropy, per row (lane-dense output) ----
    logits = conf_ref[...]                                     # (C, T)
    m = jnp.max(logits, axis=0, keepdims=True)
    lse = m + jnp.log(jnp.sum(jnp.exp(logits - m), axis=0, keepdims=True))
    lbl = labels_ref[...]                                      # (1, T) i32
    picked = logits[0:1, :]
    for k in range(1, logits.shape[0]):
        picked = jnp.where(lbl == k, logits[k:k + 1, :], picked)
    ce_ref[...] = lse - picked                                 # (1, T)

    # ---- smooth-L1 over positives (coords on sublanes, rows on lanes) ----
    d = locp_ref[...] - loct_ref[...]                          # (4, T)
    ad = jnp.abs(d)
    sl1 = jnp.where(ad < 1.0, 0.5 * d * d, ad - 0.5)
    per_row = jnp.sum(sl1, axis=0, keepdims=True) * pos_ref[...]
    acc_ref[...] += jnp.sum(per_row, axis=(0, 1), keepdims=True)

    @pl.when(pl.program_id(0) == pl.num_programs(0) - 1)
    def _():
        l1_ref[...] = acc_ref[...]


def prior_losses(conf_cr, labels_r, pos_r, locp_cr, loct_cr):
    """conf_cr (C,R), labels_r (R,), pos_r (R,), locp_cr/loct_cr (4,R).
    Returns (per-row conf CE (R,), smooth-L1 masked sum scalar)."""
    C, R = conf_cr.shape
    tile_r, r_pad = _pick_tile(R)
    pad = r_pad - R

    def pad2(x):
        return jnp.pad(x, ((0, 0), (0, pad)))

    ce, l1s = pl.pallas_call(
        _prior_loss_kernel,
        out_shape=(jax.ShapeDtypeStruct((1, r_pad), jnp.float32),
                   jax.ShapeDtypeStruct((1, 1), jnp.float32)),
        grid=(r_pad // tile_r,),
        in_specs=[
            pl.BlockSpec((C, tile_r), lambda i: (0, i)),
            pl.BlockSpec((1, tile_r), lambda i: (0, i)),
            pl.BlockSpec((1, tile_r), lambda i: (0, i)),
            pl.BlockSpec((4, tile_r), lambda i: (0, i)),
            pl.BlockSpec((4, tile_r), lambda i: (0, i)),
        ],
        out_specs=(pl.BlockSpec((1, tile_r), lambda i: (0, i)),
                   pl.BlockSpec((1, 1), lambda i: (0, 0))),
        scratch_shapes=[pltpu.VMEM((1, 1), jnp.float32)],
        compiler_params=pltpu.CompilerParams(
            dimension_semantics=("arbitrary",)),
    )(pad2(conf_cr.astype(jnp.float32)),
      pad2(labels_r.reshape(1, R).astype(jnp.int32)),
      pad2(pos_r.reshape(1, R).astype(jnp.float32)),
      pad2(locp_cr.astype(jnp.float32)),
      pad2(loct_cr.astype(jnp.float32)))
    return ce[0, :R], l1s[0, 0]


# ---------------------------------------------------------------------------
# SSD box utilities (plain JAX glue — small, data-layout heavy)
# ---------------------------------------------------------------------------
def point_form(priors):
    return jnp.concatenate(
        [priors[:, :2] - priors[:, 2:] / 2.0,
         priors[:, :2] + priors[:, 2:] / 2.0], axis=1)


def jaccard(box_a, box_b):
    max_xy = jnp.minimum(box_a[:, None, 2:], box_b[None, :, 2:])
    min_xy = jnp.maximum(box_a[:, None, :2], box_b[None, :, :2])
    inter_wh = jnp.clip(max_xy - min_xy, 0.0)
    inter = inter_wh[..., 0] * inter_wh[..., 1]
    area_a = ((box_a[:, 2] - box_a[:, 0]) * (box_a[:, 3] - box_a[:, 1]))[:, None]
    area_b = ((box_b[:, 2] - box_b[:, 0]) * (box_b[:, 3] - box_b[:, 1]))[None, :]
    return inter / (area_a + area_b - inter)


def encode(matched, priors, variances):
    g_cxcy = (matched[:, :2] + matched[:, 2:]) / 2.0 - priors[:, :2]
    g_cxcy = g_cxcy / (variances[0] * priors[:, 2:])
    g_wh = (matched[:, 2:] - matched[:, :2]) / priors[:, 2:]
    g_wh = jnp.log(g_wh) / variances[1]
    return jnp.concatenate([g_cxcy, g_wh], axis=1)


def match_one(threshold, truths, priors, variances, labels):
    # TODO(synk): like the reference, padded/degenerate GT boxes are not skipped.
    overlaps = jaccard(truths, point_form(priors))             # (T, P)
    best_prior_idx = jnp.argmax(overlaps, axis=1)              # (T,)
    best_truth_overlap = jnp.max(overlaps, axis=0)             # (P,)
    best_truth_idx = jnp.argmax(overlaps, axis=0)              # (P,)
    best_truth_overlap = best_truth_overlap.at[best_prior_idx].set(2.0)
    for j in range(truths.shape[0]):                           # T is small & static
        best_truth_idx = best_truth_idx.at[best_prior_idx[j]].set(j)
    matches = truths[best_truth_idx]                           # (P, 4)
    conf = labels[best_truth_idx].astype(jnp.int32) + 1
    conf = jnp.where(best_truth_overlap < threshold, 0, conf)
    loc = encode(matches, priors, variances)
    return loc, conf


def generate_mask(targets, batch_size):
    """Vectorised rasterisation of GT boxes to per-scale masks (last-box-wins)."""
    boxes = targets[:, :, :4]                                  # (B, T, 4)
    labels = targets[:, :, 4]                                  # (B, T)
    T = targets.shape[1]
    masks = []
    for S in MASK_SIZES:
        xmin = jnp.maximum(jnp.floor(S * boxes[:, :, 0]).astype(jnp.int32), 0)
        ymin = jnp.maximum(jnp.floor(S * boxes[:, :, 1]).astype(jnp.int32), 0)
        xmax = jnp.minimum(jnp.ceil(S * boxes[:, :, 2] + 1.0).astype(jnp.int32), S)
        ymax = jnp.minimum(jnp.ceil(S * boxes[:, :, 3] + 1.0).astype(jnp.int32), S)
        ys = jnp.arange(S)[None, None, :, None]                # (1,1,S,1)
        xs = jnp.arange(S)[None, None, None, :]                # (1,1,1,S)
        cover = ((ys >= ymin[:, :, None, None]) & (ys < ymax[:, :, None, None]) &
                 (xs >= xmin[:, :, None, None]) & (xs < xmax[:, :, None, None]))
        j_idx = jnp.arange(T, dtype=jnp.int32)[None, :, None, None]
        last_j = jnp.max(jnp.where(cover, j_idx, -1), axis=1)  # (B,S,S)
        last_safe = jnp.maximum(last_j, 0)
        val = jnp.take_along_axis(
            labels, last_safe.reshape(batch_size, -1), axis=1
        ).reshape(batch_size, S, S)
        masks.append(jnp.where(last_j >= 0, val + 1.0, 0.0))
    return masks


# ---------------------------------------------------------------------------
# Forward pass
# ---------------------------------------------------------------------------
@jax.jit
def multibox_loss_forward(loc_data, conf_data, priors, masks, targets):
    B, P, _ = loc_data.shape
    C = NUM_CLASSES

    # ---- mask (segmentation) loss: fused CE-mean Pallas kernel -------------
    mask_gt = generate_mask(targets, B)
    logit_chunks, label_chunks = [], []
    for m, m_g in zip(masks, mask_gt):
        S = m.shape[-1]
        # (B,C,S,S) -> (C, B*S*S): cheap row permutation; classes on sublanes,
        # pixels on lanes (lane-dense for the kernel).
        logit_chunks.append(
            jnp.transpose(m.reshape(B, C, S * S), (1, 0, 2)).reshape(C, B * S * S))
        label_chunks.append(m_g.reshape(B * S * S))
    total_pixel = jnp.concatenate(logit_chunks, axis=1)        # (C, Rm)
    total_mask = jnp.concatenate(label_chunks, axis=0)         # (Rm,)
    Rm = total_pixel.shape[1]
    loss_m = masked_ce_mean(total_pixel, total_mask, float(Rm))

    # ---- matching -----------------------------------------------------------
    truths = targets[:, :, :4]
    labels = targets[:, :, 4]
    loc_t, conf_t = jax.vmap(
        lambda t, l: match_one(OVERLAP_THRESH, t, priors,
                               jnp.asarray(VARIANCE, jnp.float32), l)
    )(truths, labels)                                          # (B,P,4), (B,P)
    pos = conf_t > 0                                           # (B, P) bool

    # ---- fused per-prior kernel: conf CE rows + masked smooth-L1 sum -------
    R2 = B * P
    conf_cr = conf_data.reshape(R2, C).T                       # (C, R2)
    locp_cr = loc_data.reshape(R2, 4).T                        # (4, R2)
    loct_cr = loc_t.reshape(R2, 4).T                           # (4, R2)
    ce_conf, loss_l = prior_losses(
        conf_cr, conf_t.reshape(R2), pos.reshape(R2), locp_cr, loct_cr)
    ce_conf = ce_conf.reshape(B, P)

    # ---- hard negative mining (one argsort + rank scatter) -----------------
    loss_c_mined = jnp.where(pos, 0.0, ce_conf)
    loss_idx = jnp.argsort(-loss_c_mined, axis=1)              # descending order
    ranks = jnp.broadcast_to(jnp.arange(P, dtype=jnp.int32), (B, P))
    idx_rank = jnp.zeros((B, P), jnp.int32).at[
        jnp.arange(B)[:, None], loss_idx].set(ranks)
    num_pos = jnp.sum(pos.astype(jnp.int32), axis=1, keepdims=True)
    num_neg = jnp.minimum(NEGPOS_RATIO * num_pos, P - 1)
    neg = idx_rank < num_neg
    select = jnp.logical_or(pos, neg)
    loss_c = jnp.sum(ce_conf * select.astype(jnp.float32))

    N = jnp.sum(num_pos).astype(jnp.float32)
    # TODO(synk): no N==0 guard (matches the reference, which also div-by-zeroes).
    loss_l = loss_l / N * 2.0
    loss_c = loss_c / N * 2.0
    return loss_l, loss_c, loss_m


# ---------------------------------------------------------------------------
# Example run
# ---------------------------------------------------------------------------
if __name__ == "__main__":
    B = 2
    P = 128            # num priors
    T = 3              # gt boxes per image
    C = NUM_CLASSES

    key = jax.random.PRNGKey(0)
    keys = jax.random.split(key, 12)

    loc_data = 0.1 * jax.random.normal(keys[0], (B, P, 4), jnp.float32)
    conf_data = jax.random.normal(keys[1], (B, P, C), jnp.float32)

    cx = jax.random.uniform(keys[2], (P,), minval=0.05, maxval=0.95)
    cy = jax.random.uniform(keys[3], (P,), minval=0.05, maxval=0.95)
    w = jax.random.uniform(keys[4], (P,), minval=0.05, maxval=0.30)
    h = jax.random.uniform(keys[5], (P,), minval=0.05, maxval=0.30)
    priors = jnp.stack([cx, cy, w, h], axis=1).astype(jnp.float32)

    masks = tuple(
        jax.random.normal(k, (B, C, S, S), jnp.float32)
        for k, S in zip(keys[6:9], MASK_SIZES)
    )

    x0 = jax.random.uniform(keys[9], (B, T), minval=0.05, maxval=0.45)
    y0 = jax.random.uniform(keys[10], (B, T), minval=0.05, maxval=0.45)
    bw = jax.random.uniform(keys[11], (B, T), minval=0.15, maxval=0.40)
    bh = jax.random.uniform(keys[0], (B, T), minval=0.15, maxval=0.40)
    lbl = jax.random.randint(keys[1], (B, T), 0, 2).astype(jnp.float32)
    targets = jnp.stack([x0, y0, jnp.minimum(x0 + bw, 0.99),
                         jnp.minimum(y0 + bh, 0.99), lbl], axis=-1)

    loss_l, loss_c, loss_m = multibox_loss_forward(
        loc_data, conf_data, priors, masks, targets)
    jax.block_until_ready((loss_l, loss_c, loss_m))
    print("KERNEL_OK")
</pallas_src>

<mosaic_0001>
module attributes {stable_mosaic.version = 11 : i64} {
  func.func @_ce_sum_kernel(%arg0: i32, %arg1: memref<4x2048xf32, #tpu.memory_space<vmem>>, %arg2: memref<1x2048xi32, #tpu.memory_space<vmem>>, %arg3: memref<1x1xf32, #tpu.memory_space<vmem>>, %arg4: memref<1x1xf32, #tpu.memory_space<vmem>>) attributes {dimension_semantics = [#tpu.dimension_semantics<arbitrary>], iteration_bounds = array<i64: 4>, scalar_prefetch = 0 : i64, scratch_operands = 1 : i64, tpu.core_type = #tpu.core_type<tc>, window_params = [{transform_indices = @transform_0, window_bounds = array<i64: 4, 2048>}, {transform_indices = @transform_1, window_bounds = array<i64: 1, 2048>}, {pipeline_mode = #tpu.pipeline_mode<synchronous>, transform_indices = @transform_2, window_bounds = array<i64: 1, 1>}]} {
    %c0_i32 = arith.constant 0 : i32
    %0 = arith.cmpi eq, %arg0, %c0_i32 : i32
    %1 = arith.extui %0 : i1 to i32
    %c0_i32_0 = arith.constant 0 : i32
    %2 = arith.cmpi ne, %1, %c0_i32_0 : i32
    scf.if %2 {
      %cst_12 = arith.constant 0.000000e+00 : f32
      %48 = vector.broadcast %cst_12 : f32 to vector<1x1xf32>
      %c0_13 = arith.constant 0 : index
      %c0_14 = arith.constant 0 : index
      %49 = vector.load %arg4[%c0_13, %c0_14] : memref<1x1xf32, #tpu.memory_space<vmem>>, vector<1x1xf32>
      tpu.vector_store %arg4[%c0_13, %c0_14], %48 {strides = array<i32>} : memref<1x1xf32, #tpu.memory_space<vmem>>, vector<1x1xf32>,
    } else {
    }
    %c0 = arith.constant 0 : index
    %c0_1 = arith.constant 0 : index
    %3 = vector.load %arg1[%c0, %c0_1] : memref<4x2048xf32, #tpu.memory_space<vmem>>, vector<4x2048xf32>
    %cst = arith.constant dense<0xFF800000> : vector<2048xf32>
    %4 = vector.multi_reduction <maximumf>, %3, %cst [0] : vector<4x2048xf32> to vector<2048xf32>
    %5 = vector.shape_cast %4 : vector<2048xf32> to vector<1x2048xf32>
    %6 = vector.broadcast %5 : vector<1x2048xf32> to vector<4x2048xf32>
    %7 = arith.subf %3, %6 : vector<4x2048xf32>
    %8 = math.exp %7 : vector<4x2048xf32>
    %cst_2 = arith.constant dense<0.000000e+00> : vector<2048xf32>
    %9 = vector.multi_reduction <add>, %8, %cst_2 [0] : vector<4x2048xf32> to vector<2048xf32>
    %10 = vector.shape_cast %9 : vector<2048xf32> to vector<1x2048xf32>
    %11 = math.log %10 : vector<1x2048xf32>
    %12 = arith.addf %5, %11 : vector<1x2048xf32>
    %c0_3 = arith.constant 0 : index
    %c0_4 = arith.constant 0 : index
    %13 = vector.load %arg2[%c0_3, %c0_4] : memref<1x2048xi32, #tpu.memory_space<vmem>>, vector<1x2048xi32>
    %14 = vector.extract_strided_slice %3 {offsets = [0, 0], sizes = [1, 2048], strides = [1, 1]} : vector<4x2048xf32> to vector<1x2048xf32>
    %c1_i32 = arith.constant 1 : i32
    %15 = vector.broadcast %c1_i32 : i32 to vector<1x2048xi32>
    %16 = arith.cmpi eq, %13, %15 : vector<1x2048xi32>
    %17 = vector.extract_strided_slice %3 {offsets = [1, 0], sizes = [1, 2048], strides = [1, 1]} : vector<4x2048xf32> to vector<1x2048xf32>
    %18 = arith.select %16, %17, %14 : vector<1x2048xi1>, vector<1x2048xf32>
    %c2_i32 = arith.constant 2 : i32
    %19 = vector.broadcast %c2_i32 : i32 to vector<1x2048xi32>
    %20 = arith.cmpi eq, %13, %19 : vector<1x2048xi32>
    %21 = vector.extract_strided_slice %3 {offsets = [2, 0], sizes = [1, 2048], strides = [1, 1]} : vector<4x2048xf32> to vector<1x2048xf32>
    %22 = arith.select %20, %21, %18 : vector<1x2048xi1>, vector<1x2048xf32>
    %c3_i32 = arith.constant 3 : i32
    %23 = vector.broadcast %c3_i32 : i32 to vector<1x2048xi32>
    %24 = arith.cmpi eq, %13, %23 : vector<1x2048xi32>
    %25 = vector.extract_strided_slice %3 {offsets = [3, 0], sizes = [1, 2048], strides = [1, 1]} : vector<4x2048xf32> to vector<1x2048xf32>
    %26 = arith.select %24, %25, %22 : vector<1x2048xi1>, vector<1x2048xf32>
    %27 = tpu.iota {dimensions = array<i32: 1>} : vector<1x2048xi32>
    %c2048_i32 = arith.constant 2048 : i32
    %28 = arith.muli %arg0, %c2048_i32 : i32
    %29 = vector.broadcast %28 : i32 to vector<1x2048xi32>
    %30 = arith.addi %29, %27 : vector<1x2048xi32>
    %c6588_i32 = arith.constant 6588 : i32
    %31 = vector.broadcast %c6588_i32 : i32 to vector<1x2048xi32>
    %32 = arith.cmpi slt, %30, %31 : vector<1x2048xi32>
    %33 = arith.extui %32 : vector<1x2048xi1> to vector<1x2048xi32>
    %34 = arith.sitofp %33 : vector<1x2048xi32> to vector<1x2048xf32>
    %c0_5 = arith.constant 0 : index
    %c0_6 = arith.constant 0 : index
    %35 = vector.load %arg4[%c0_5, %c0_6] : memref<1x1xf32, #tpu.memory_space<vmem>>, vector<1x1xf32>
    %36 = arith.subf %12, %26 : vector<1x2048xf32>
    %37 = arith.mulf %36, %34 : vector<1x2048xf32>
    %38 = vector.shape_cast %37 : vector<1x2048xf32> to vector<1x1x2048xf32>
    %cst_7 = arith.constant dense<0.000000e+00> : vector<1xf32>
    %39 = vector.multi_reduction <add>, %38, %cst_7 [1, 2] : vector<1x1x2048xf32> to vector<1xf32>
    %40 = vector.shape_cast %39 : vector<1xf32> to vector<1x1x1xf32>
    %41 = vector.extract %40[0, 0, 0] : f32 from vector<1x1x1xf32>
    %42 = vector.broadcast %41 : f32 to vector<1x1xf32>
    %43 = arith.addf %35, %42 : vector<1x1xf32>
    %c0_8 = arith.constant 0 : index
    %c0_9 = arith.constant 0 : index
    %44 = vector.load %arg4[%c0_8, %c0_9] : memref<1x1xf32, #tpu.memory_space<vmem>>, vector<1x1xf32>
    tpu.vector_store %arg4[%c0_8, %c0_9], %43 {strides = array<i32>} : memref<1x1xf32, #tpu.memory_space<vmem>>, vector<1x1xf32>,
    %c3_i32_10 = arith.constant 3 : i32
    %45 = arith.cmpi eq, %arg0, %c3_i32_10 : i32
    %46 = arith.extui %45 : i1 to i32
    %c0_i32_11 = arith.constant 0 : i32
    %47 = arith.cmpi ne, %46, %c0_i32_11 : i32
    scf.if %47 {
      %c0_12 = arith.constant 0 : index
      %c0_13 = arith.constant 0 : index
      %48 = vector.load %arg4[%c0_12, %c0_13] : memref<1x1xf32, #tpu.memory_space<vmem>>, vector<1x1xf32>
      %c0_14 = arith.constant 0 : index
      %c0_15 = arith.constant 0 : index
      %49 = vector.load %arg3[%c0_14, %c0_15] : memref<1x1xf32, #tpu.memory_space<vmem>>, vector<1x1xf32>
      tpu.vector_store %arg3[%c0_14, %c0_15], %48 {strides = array<i32>} : memref<1x1xf32, #tpu.memory_space<vmem>>, vector<1x1xf32>,
    } else {
    }
    return
  }
  func.func @transform_0(%arg0: i32) -> (i32, i32) {
    %c0_i32 = arith.constant 0 : i32
    %c0_i32_0 = arith.constant 0 : i32
    return %c0_i32, %arg0 : i32, i32
  }
  func.func @transform_1(%arg0: i32) -> (i32, i32) {
    %c0_i32 = arith.constant 0 : i32
    %c0_i32_0 = arith.constant 0 : i32
    return %c0_i32, %arg0 : i32, i32
  }
  func.func @transform_2(%arg0: i32) -> (i32, i32) {
    %c0_i32 = arith.constant 0 : i32
    %c0_i32_0 = arith.constant 0 : i32
    %c0_i32_1 = arith.constant 0 : i32
    return %c0_i32, %c0_i32_0 : i32, i32
  }
}

module attributes {stable_mosaic.version = 11 : i64} {
  func.func @_prior_loss_kernel(%arg0: i32, %arg1: memref<4x256xf32, #tpu.memory_space<vmem>>, %arg2: memref<1x256xi32, #tpu.memory_space<vmem>>, %arg3: memref<1x256xf32, #tpu.memory_space<vmem>>, %arg4: memref<4x256xf32, #tpu.memory_space<vmem>>, %arg5: memref<4x256xf32, #tpu.memory_space<vmem>>, %arg6: memref<1x256xf32, #tpu.memory_space<vmem>>, %arg7: memref<1x1xf32, #tpu.memory_space<vmem>>, %arg8: memref<1x1xf32, #tpu.memory_space<vmem>>) attributes {dimension_semantics = [#tpu.dimension_semantics<arbitrary>], iteration_bounds = array<i64: 1>, scalar_prefetch = 0 : i64, scratch_operands = 1 : i64, tpu.core_type = #tpu.core_type<tc>, window_params = [{transform_indices = @transform_0, window_bounds = array<i64: 4, 256>}, {transform_indices = @transform_1, window_bounds = array<i64: 1, 256>}, {transform_indices = @transform_2, window_bounds = array<i64: 1, 256>}, {transform_indices = @transform_3, window_bounds = array<i64: 4, 256>}, {transform_indices = @transform_4, window_bounds = array<i64: 4, 256>}, {transform_indices = @transform_5, window_bounds = array<i64: 1, 256>}, {pipeline_mode = #tpu.pipeline_mode<synchronous>, transform_indices = @transform_6, window_bounds = array<i64: 1, 1>}]} {
    %c0_i32 = arith.constant 0 : i32
    %0 = arith.cmpi eq, %arg0, %c0_i32 : i32
    %1 = arith.extui %0 : i1 to i32
    %c0_i32_0 = arith.constant 0 : i32
    %2 = arith.cmpi ne, %1, %c0_i32_0 : i32
    scf.if %2 {
      %cst_24 = arith.constant 0.000000e+00 : f32
      %56 = vector.broadcast %cst_24 : f32 to vector<1x1xf32>
      %c0_25 = arith.constant 0 : index
      %c0_26 = arith.constant 0 : index
      %57 = vector.load %arg8[%c0_25, %c0_26] : memref<1x1xf32, #tpu.memory_space<vmem>>, vector<1x1xf32>
      tpu.vector_store %arg8[%c0_25, %c0_26], %56 {strides = array<i32>} : memref<1x1xf32, #tpu.memory_space<vmem>>, vector<1x1xf32>,
    } else {
    }
    %c0 = arith.constant 0 : index
    %c0_1 = arith.constant 0 : index
    %3 = vector.load %arg1[%c0, %c0_1] : memref<4x256xf32, #tpu.memory_space<vmem>>, vector<4x256xf32>
    %cst = arith.constant dense<0xFF800000> : vector<256xf32>
    %4 = vector.multi_reduction <maximumf>, %3, %cst [0] : vector<4x256xf32> to vector<256xf32>
    %5 = vector.shape_cast %4 : vector<256xf32> to vector<1x256xf32>
    %6 = vector.broadcast %5 : vector<1x256xf32> to vector<4x256xf32>
    %7 = arith.subf %3, %6 : vector<4x256xf32>
    %8 = math.exp %7 : vector<4x256xf32>
    %cst_2 = arith.constant dense<0.000000e+00> : vector<256xf32>
    %9 = vector.multi_reduction <add>, %8, %cst_2 [0] : vector<4x256xf32> to vector<256xf32>
    %10 = vector.shape_cast %9 : vector<256xf32> to vector<1x256xf32>
    %11 = math.log %10 : vector<1x256xf32>
    %12 = arith.addf %5, %11 : vector<1x256xf32>
    %c0_3 = arith.constant 0 : index
    %c0_4 = arith.constant 0 : index
    %13 = vector.load %arg2[%c0_3, %c0_4] : memref<1x256xi32, #tpu.memory_space<vmem>>, vector<1x256xi32>
    %14 = vector.extract_strided_slice %3 {offsets = [0, 0], sizes = [1, 256], strides = [1, 1]} : vector<4x256xf32> to vector<1x256xf32>
    %c1_i32 = arith.constant 1 : i32
    %15 = vector.broadcast %c1_i32 : i32 to vector<1x256xi32>
    %16 = arith.cmpi eq, %13, %15 : vector<1x256xi32>
    %17 = vector.extract_strided_slice %3 {offsets = [1, 0], sizes = [1, 256], strides = [1, 1]} : vector<4x256xf32> to vector<1x256xf32>
    %18 = arith.select %16, %17, %14 : vector<1x256xi1>, vector<1x256xf32>
    %c2_i32 = arith.constant 2 : i32
    %19 = vector.broadcast %c2_i32 : i32 to vector<1x256xi32>
    %20 = arith.cmpi eq, %13, %19 : vector<1x256xi32>
    %21 = vector.extract_strided_slice %3 {offsets = [2, 0], sizes = [1, 256], strides = [1, 1]} : vector<4x256xf32> to vector<1x256xf32>
    %22 = arith.select %20, %21, %18 : vector<1x256xi1>, vector<1x256xf32>
    %c3_i32 = arith.constant 3 : i32
    %23 = vector.broadcast %c3_i32 : i32 to vector<1x256xi32>
    %24 = arith.cmpi eq, %13, %23 : vector<1x256xi32>
    %25 = vector.extract_strided_slice %3 {offsets = [3, 0], sizes = [1, 256], strides = [1, 1]} : vector<4x256xf32> to vector<1x256xf32>
    %26 = arith.select %24, %25, %22 : vector<1x256xi1>, vector<1x256xf32>
    %27 = arith.subf %12, %26 : vector<1x256xf32>
    %c0_5 = arith.constant 0 : index
    %c0_6 = arith.constant 0 : index
    %28 = vector.load %arg6[%c0_5, %c0_6] : memref<1x256xf32, #tpu.memory_space<vmem>>, vector<1x256xf32>
    tpu.vector_store %arg6[%c0_5, %c0_6], %27 {strides = array<i32>} : memref<1x256xf32, #tpu.memory_space<vmem>>, vector<1x256xf32>,
    %c0_7 = arith.constant 0 : index
    %c0_8 = arith.constant 0 : index
    %29 = vector.load %arg4[%c0_7, %c0_8] : memref<4x256xf32, #tpu.memory_space<vmem>>, vector<4x256xf32>
    %c0_9 = arith.constant 0 : index
    %c0_10 = arith.constant 0 : index
    %30 = vector.load %arg5[%c0_9, %c0_10] : memref<4x256xf32, #tpu.memory_space<vmem>>, vector<4x256xf32>
    %31 = arith.subf %29, %30 : vector<4x256xf32>
    %32 = math.absf %31 : vector<4x256xf32>
    %cst_11 = arith.constant 1.000000e+00 : f32
    %33 = vector.broadcast %cst_11 : f32 to vector<4x256xf32>
    %34 = arith.cmpf olt, %32, %33 : vector<4x256xf32>
    %cst_12 = arith.constant 5.000000e-01 : f32
    %35 = vector.broadcast %cst_12 : f32 to vector<4x256xf32>
    %36 = arith.mulf %35, %31 : vector<4x256xf32>
    %37 = arith.mulf %36, %31 : vector<4x256xf32>
    %cst_13 = arith.constant 5.000000e-01 : f32
    %38 = vector.broadcast %cst_13 : f32 to vector<4x256xf32>
    %39 = arith.subf %32, %38 : vector<4x256xf32>
    %40 = arith.select %34, %37, %39 : vector<4x256xi1>, vector<4x256xf32>
    %cst_14 = arith.constant dense<0.000000e+00> : vector<256xf32>
    %41 = vector.multi_reduction <add>, %40, %cst_14 [0] : vector<4x256xf32> to vector<256xf32>
    %42 = vector.shape_cast %41 : vector<256xf32> to vector<1x256xf32>
    %c0_15 = arith.constant 0 : index
    %c0_16 = arith.constant 0 : index
    %43 = vector.load %arg3[%c0_15, %c0_16] : memref<1x256xf32, #tpu.memory_space<vmem>>, vector<1x256xf32>
    %44 = arith.mulf %42, %43 : vector<1x256xf32>
    %c0_17 = arith.constant 0 : index
    %c0_18 = arith.constant 0 : index
    %45 = vector.load %arg8[%c0_17, %c0_18] : memref<1x1xf32, #tpu.memory_space<vmem>>, vector<1x1xf32>
    %46 = vector.shape_cast %44 : vector<1x256xf32> to vector<1x1x256xf32>
    %cst_19 = arith.constant dense<0.000000e+00> : vector<1xf32>
    %47 = vector.multi_reduction <add>, %46, %cst_19 [1, 2] : vector<1x1x256xf32> to vector<1xf32>
    %48 = vector.shape_cast %47 : vector<1xf32> to vector<1x1x1xf32>
    %49 = vector.extract %48[0, 0, 0] : f32 from vector<1x1x1xf32>
    %50 = vector.broadcast %49 : f32 to vector<1x1xf32>
    %51 = arith.addf %45, %50 : vector<1x1xf32>
    %c0_20 = arith.constant 0 : index
    %c0_21 = arith.constant 0 : index
    %52 = vector.load %arg8[%c0_20, %c0_21] : memref<1x1xf32, #tpu.memory_space<vmem>>, vector<1x1xf32>
    tpu.vector_store %arg8[%c0_20, %c0_21], %51 {strides = array<i32>} : memref<1x1xf32, #tpu.memory_space<vmem>>, vector<1x1xf32>,
    %c0_i32_22 = arith.constant 0 : i32
    %53 = arith.cmpi eq, %arg0, %c0_i32_22 : i32
    %54 = arith.extui %53 : i1 to i32
    %c0_i32_23 = arith.constant 0 : i32
    %55 = arith.cmpi ne, %54, %c0_i32_23 : i32
    scf.if %55 {
      %c0_24 = arith.constant 0 : index
      %c0_25 = arith.constant 0 : index
      %56 = vector.load %arg8[%c0_24, %c0_25] : memref<1x1xf32, #tpu.memory_space<vmem>>, vector<1x1xf32>
      %c0_26 = arith.constant 0 : index
      %c0_27 = arith.constant 0 : index
      %57 = vector.load %arg7[%c0_26, %c0_27] : memref<1x1xf32, #tpu.memory_space<vmem>>, vector<1x1xf32>
      tpu.vector_store %arg7[%c0_26, %c0_27], %56 {strides = array<i32>} : memref<1x1xf32, #tpu.memory_space<vmem>>, vector<1x1xf32>,
    } else {
    }
    return
  }
  func.func @transform_0(%arg0: i32) -> (i32, i32) {
    %c0_i32 = arith.constant 0 : i32
    %c0_i32_0 = arith.constant 0 : i32
    return %c0_i32, %arg0 : i32, i32
  }
  func.func @transform_1(%arg0: i32) -> (i32, i32) {
    %c0_i32 = arith.constant 0 : i32
    %c0_i32_0 = arith.constant 0 : i32
    return %c0_i32, %arg0 : i32, i32
  }
  func.func @transform_2(%arg0: i32) -> (i32, i32) {
    %c0_i32 = arith.constant 0 : i32
    %c0_i32_0 = arith.constant 0 : i32
    return %c0_i32, %arg0 : i32, i32
  }
  func.func @transform_3(%arg0: i32) -> (i32, i32) {
    %c0_i32 = arith.constant 0 : i32
    %c0_i32_0 = arith.constant 0 : i32
    return %c0_i32, %arg0 : i32, i32
  }
  func.func @transform_4(%arg0: i32) -> (i32, i32) {
    %c0_i32 = arith.constant 0 : i32
    %c0_i32_0 = arith.constant 0 : i32
    return %c0_i32, %arg0 : i32, i32
  }
  func.func @transform_5(%arg0: i32) -> (i32, i32) {
    %c0_i32 = arith.constant 0 : i32
    %c0_i32_0 = arith.constant 0 : i32
    return %c0_i32, %arg0 : i32, i32
  }
  func.func @transform_6(%arg0: i32) -> (i32, i32) {
    %c0_i32 = arith.constant 0 : i32
    %c0_i32_0 = arith.constant 0 : i32
    %c0_i32_1 = arith.constant 0 : i32
    return %c0_i32, %c0_i32_0 : i32, i32
  }
}

</mosaic_0001>

<bundles_post_ra>
// kernel: multibox_loss_forward.2
= control target key start
LH: loop header
LB: loop body
LE: loop exit
PB: predicated region body
PF: predicated region fallthrough
CT: control target
= control target key end

     0   :  { %7 = vsyncpa [#allocation4], 0  ;;  %s1159_s9 = smov 0   ;;  %s1702_s0 = inlined_call_operand.vmem [shape: f32[4,8192], index: 0, kind: input, shape index: {}]   ;;  %s1703_s1 = inlined_call_operand.vmem [shape: s32[1,8192], index: 1, kind: input, shape index: {}]   ;;  %s1704_s2 = inlined_call_operand.hbm [shape: f32[1,1], index: 2, kind: output, shape index: {}]  }
   0x1 LB: > { %s1165_s10 = sadd.s32 4294967295, %s1138_s9   ;;  %p999_p0 = scmp.ge.s32.totalorder %s1138_s9, 1  ;;  %s1138_s9 = sphi %s1159_s9, %s13_s9  }
   0x2   : > { %p119_p1 = scmp.lt.s32.totalorder %s1138_s9, 5 }
   0x4   : > { %p120_p2 = pnand %p999_p0, %p119_p1 }
   0x6   : > { %123 = sbr.rel (%p120_p2) target bundleno = 406 (0x196), region = 28 }
   0xd   : > { %s1000_s11 = sshll.u32 %s1165_s10, 4  ;;  %p1003_p4 = scmp.ne.s32.totalorder %s1165_s10, 0 }
   0xe   : > { %p141_p3 = scmp.lt.s32.totalorder %s1000_s11, 63  ;;  %vm155_vm0 = vcmask (!%p1003_p4), 0   ;;  %v1140_v0 = vmov (!%p1003_p4), 0.0  }
   0xf   : > { %154 = sbr.rel (%p1003_p4) target bundleno = 22 (0x16), region = 32  ;;  %156 = vst.msk [vmem:[#allocation2] sm:$0x1] (!%p1003_p4), %vm155_vm0, %v1140_v0 }
  0x10   : > { %s1750_s11 = smov (!%p141_p3, %s1000_s11), 63 }
  0x11   : > { %s1001_s12 = sshll.u32 %s1750_s11, 2  ;;  %s1173_s15 = scalar_lea.vmem %s1703_s1, %s1750_s11 }
  0x12   : > { %s1178_s18 = scalar_lea.vmem %s1702_s0, %s1001_s12 }
  0x16 PF: > { %v1182_v1 = vld [vmem:[%s1178_s18] sm:$0xff]  ;;  %v1185_v2 = vld [vmem:[%s1178_s18 + $0x8] sm:$0xff]  ;;  %v1188_v3 = vld [vmem:[%s1178_s18 + $0x10] sm:$0xff]  ;;  %vm189_vm1 = vcmask 1043456   ;;  %s1004_s19 = sshll.u32 %s1165_s10, 11  ;;  %vm890_vm0 = vcmask 1040384  }
  0x17   : > { %v1191_v4 = vld [vmem:[%s1178_s18 + $0x18] sm:$0xff]  ;;  %v173_v5 = vcombine.high %v1182_v1, %v1182_v1  ;;  %v174_v6 = vcombine.high %v1185_v2, %v1185_v2  ;;  %v175_v7 = vcombine.high %v1188_v3, %v1188_v3  ;;  %v190_v8 = vsel %vm189_vm1, %v1182_v1, -inf  ;;  %v1214_v33 = vld [vmem:[%s1178_s18 + $0x20] sm:$0xff]  ;;  %v1217_v39 = vld [vmem:[%s1178_s18 + $0x28] sm:$0xff]  ;;  %p1021_p5 = scmp.ne.s32.totalorder %s1165_s10, 3 }
  0x18   : > { %v191_v9 = vrot.slane %v190_v8, 4  ;;  %v176_v10 = vcombine.high %v1191_v4, %v1191_v4  ;;  %v204_v12 = vsel %vm189_vm1, %v1185_v2, -inf  ;;  %v218_v18 = vsel %vm189_vm1, %v1188_v3, -inf  ;;  %v1220_v40 = vld [vmem:[%s1178_s18 + $0x30] sm:$0xff]  ;;  %v1223_v41 = vld [vmem:[%s1178_s18 + $0x38] sm:$0xff] }
  0x19   : > { %v197_v11 = vsel %vm189_vm1, %v173_v5, -inf  ;;  %v205_v15 = vrot.slane %v204_v12, 4  ;;  %v211_v16 = vsel %vm189_vm1, %v174_v6, -inf  ;;  %v225_v19 = vsel %vm189_vm1, %v175_v7, -inf }
  0x1a   : > { %v192_v13 = vmax.f32 %v190_v8, %v191_v9  ;;  %v198_v14 = vrot.slane %v197_v11, 4  ;;  %v212_v17 = vrot.slane %v211_v16, 4  ;;  %v232_v20 = vsel %vm189_vm1, %v1191_v4, -inf }
  0x1b   : > { %v206_v23 = vmax.f32 %v204_v12, %v205_v15  ;;  %v219_v24 = vrot.slane %v218_v18, 4  ;;  %v226_v26 = vrot.slane %v225_v19, 4  ;;  %v233_v27 = vrot.slane %v232_v20, 4 }
  0x1c   : > { %v193_v21 = vrot.slane %v192_v13, 2  ;;  %v199_v22 = vmax.f32 %v197_v11, %v198_v14  ;;  %v213_v25 = vmax.f32 %v211_v16, %v212_v17  ;;  %v239_v28 = vsel %vm189_vm1, %v176_v10, -inf }
  0x1d   : > { %v207_v31 = vrot.slane %v206_v23, 2  ;;  %v220_v32 = vmax.f32 %v218_v18, %v219_v24  ;;  %v227_v35 = vmax.f32 %v225_v19, %v226_v26  ;;  %v234_v36 = vmax.f32 %v232_v20, %v233_v27 }
  0x1e   : > { %v194_v29 = vmax.f32 %v192_v13, %v193_v21  ;;  %v200_v30 = vrot.slane %v199_v22, 2  ;;  %v214_v34 = vrot.slane %v213_v25, 2  ;;  %v240_v37 = vrot.slane %v239_v28, 4 }
  0x1f   : > { %v208_v43 = vmax.f32 %v206_v23, %v207_v31  ;;  %v221_v44 = vrot.slane %v220_v32, 2  ;;  %v177_v46 = vcombine.high %v1214_v33, %v1214_v33  ;;  %v228_v49 = vrot.slane %v227_v35, 2 }
  0x20   : > { %v201_v38 = vmax.f32 %v199_v22, %v200_v30  ;;  %v195_v42 = vrot.slane %v194_v29, 1  ;;  %v241_v45 = vmax.f32 %v239_v28, %v240_v37  ;;  %v215_v47 = vmax.f32 %v213_v25, %v214_v34 }
  0x21   : > { %v235_v50 = vrot.slane %v234_v36, 2  ;;  %v178_v51 = vcombine.high %v1217_v39, %v1217_v39  ;;  %v179_v52 = vcombine.high %v1220_v40, %v1220_v40  ;;  %v180_v53 = vcombine.high %v1223_v41, %v1223_v41 }
  0x22   : > { %v202_v48 = vrot.slane %v201_v38, 1  ;;  %v246_v54 = vsel %vm189_vm1, %v1214_v33, -inf  ;;  %v1235_v55 = vmax.f32 %v194_v29, %v195_v42  ;;  %v209_v56 = vrot.slane %v208_v43, 1 }
  0x23   : > { %v222_v57 = vmax.f32 %v220_v32, %v221_v44  ;;  %v242_v58 = vrot.slane %v241_v45, 2  ;;  %v216_v59 = vrot.slane %v215_v47, 1  ;;  %v247_v60 = vrot.slane %v246_v54, 4 }
  0x24   : > { %v253_v61 = vsel %vm189_vm1, %v177_v46, -inf  ;;  %v260_v62 = vsel %vm189_vm1, %v1217_v39, -inf  ;;  %v1240_v63 = vmax.f32 %v201_v38, %v202_v48  ;;  %v229_v0 = vmax.f32 %v227_v35, %v228_v49 }
  0x25   : > { %v236_v5 = vmax.f32 %v234_v36, %v235_v50  ;;  %v254_v6 = vrot.slane %v253_v61, 4  ;;  %v248_v7 = vmax.f32 %v246_v54, %v247_v60  ;;  %v261_v8 = vrot.slane %v260_v62, 4 }
  0x26   : > { %v267_v9 = vsel %vm189_vm1, %v178_v51, -inf  ;;  %v274_v10 = vsel %vm189_vm1, %v1220_v40, -inf  ;;  %v243_v11 = vmax.f32 %v241_v45, %v242_v58  ;;  %v281_v17 = vsel %vm189_vm1, %v179_v52, -inf }
  0x27   : > { %v255_v12 = vmax.f32 %v253_v61, %v254_v6  ;;  %v268_v13 = vrot.slane %v267_v9, 4  ;;  %v275_v14 = vrot.slane %v274_v10, 4  ;;  %v249_v15 = vrot.slane %v248_v7, 2 }
  0x28   : > { %v262_v16 = vmax.f32 %v260_v62, %v261_v8  ;;  %v288_v18 = vsel %vm189_vm1, %v1223_v41, -inf  ;;  %v223_v19 = vrot.slane %v222_v57, 1  ;;  %v282_v22 = vrot.slane %v281_v17, 4 }
  0x29   : > { %v256_v20 = vrot.slane %v255_v12, 2  ;;  %v269_v21 = vmax.f32 %v267_v9, %v268_v13  ;;  %v230_v23 = vrot.slane %v229_v0, 1  ;;  %v237_v24 = vrot.slane %v236_v5, 1 }
  0x2a   : > { %v289_v25 = vrot.slane %v288_v18, 4  ;;  %v295_v26 = vsel %vm189_vm1, %v180_v53, -inf  ;;  %v244_v27 = vrot.slane %v243_v11, 1  ;;  %v250_v28 = vmax.f32 %v248_v7, %v249_v15 }
  0x2b   : > { %v263_v29 = vrot.slane %v262_v16, 2  ;;  %v276_v30 = vmax.f32 %v274_v10, %v275_v14  ;;  %v257_v31 = vmax.f32 %v255_v12, %v256_v20  ;;  %v270_v32 = vrot.slane %v269_v21, 2 }
  0x2c   : > { %v283_v34 = vmax.f32 %v281_v17, %v282_v22  ;;  %v296_v35 = vrot.slane %v295_v26, 4  ;;  %v1249_v36 = vmax.f32 %v208_v43, %v209_v56  ;;  %v1251_v37 = vmax.f32 %v215_v47, %v216_v59 }
  0x2d   : > { %v290_v38 = vmax.f32 %v288_v18, %v289_v25  ;;  %v1253_v42 = vmax.f32 %v222_v57, %v223_v19  ;;  %v1255_v44 = vmax.f32 %v229_v0, %v230_v23  ;;  %v1257_v45 = vmax.f32 %v236_v5, %v237_v24 }
  0x2e   : > { %v297_v46 = vmax.f32 %v295_v26, %v296_v35  ;;  %v1259_v48 = vmax.f32 %v243_v11, %v244_v27  ;;  %v251_v49 = vrot.slane %v250_v28, 1  ;;  %v264_v50 = vmax.f32 %v262_v16, %v263_v29 }
  0x2f   : > { %1718 = vst [vmem:[#allocation6_spill] sm:$0xff] %v1253_v42  ;;  %1719 = vst [vmem:[#allocation7_spill] sm:$0xff] %v1255_v44  ;;  %v277_v51 = vrot.slane %v276_v30, 2  ;;  %v258_v52 = vrot.slane %v257_v31, 1  ;;  %v271_v53 = vmax.f32 %v269_v21, %v270_v32  ;;  %v284_v54 = vrot.slane %v283_v34, 2 }
  0x30   : > { %1720 = vst [vmem:[#allocation8_spill] sm:$0xff] %v1257_v45  ;;  %1721 = vst [vmem:[#allocation9_spill] sm:$0xff] %v1259_v48  ;;  %v318_v43 = vcombine.low %v1235_v55, %v1240_v63  ;;  %v291_v47 = vrot.slane %v290_v38, 2  ;;  %v298_v56 = vrot.slane %v297_v46, 2  ;;  %v319_v57 = vcombine.low %v1249_v36, %v1251_v37 }
  0x31   : > { %v320_v58 = vcombine.low %v1253_v42, %v1255_v44  ;;  %v1267_v59 = vmax.f32 %v250_v28, %v251_v49  ;;  %v265_v60 = vrot.slane %v264_v50, 1  ;;  %v278_v61 = vmax.f32 %v276_v30, %v277_v51 }
  0x32   : > { %v321_v62 = vcombine.low %v1257_v45, %v1259_v48  ;;  %v1271_v0 = vmax.f32 %v257_v31, %v258_v52  ;;  %v272_v5 = vrot.slane %v271_v53, 1  ;;  %v285_v6 = vmax.f32 %v283_v34, %v284_v54  ;;  %v1383_v48 = vld [vmem:[%s1173_s15 + $0x8] sm:$0xff] }
  0x33   : > { %1722 = vst [vmem:[#allocation10_spill] sm:$0xff] %v1267_v59  ;;  %v334_v7 = vsub.f32 %v1182_v1, %v318_v43  ;;  %v292_v8 = vmax.f32 %v290_v38, %v291_v47  ;;  %v299_v9 = vmax.f32 %v297_v46, %v298_v56  ;;  %v335_v10 = vsub.f32 %v1185_v2, %v319_v57 }
  0x34   : > { %1723 = vst [vmem:[#allocation11_spill] sm:$0xff] %v1271_v0  ;;  %v336_v11 = vsub.f32 %v1188_v3, %v320_v58  ;;  %v1276_v12 = vmax.f32 %v264_v50, %v265_v60  ;;  %v279_v13 = vrot.slane %v278_v61, 1  ;;  %v337_v14 = vsub.f32 %v1191_v4, %v321_v62 }
  0x35   : > { %v1279_v15 = vmax.f32 %v271_v53, %v272_v5  ;;  %v286_v16 = vrot.slane %v285_v6, 1  ;;  %v322_v17 = vcombine.low %v1267_v59, %v1271_v0  ;;  %v342_v18 = vmul.f32 1.442695, %v334_v7 }
  0x36   : > { %1724 = vst [vmem:[#allocation12_spill] sm:$0xff] %v1276_v12  ;;  %v293_v19 = vrot.slane %v292_v8, 1  ;;  %v300_v20 = vrot.slane %v299_v9, 1  ;;  %v344_v21 = vmul.f32 1.442695, %v335_v10  ;;  %v1283_v23 = vmax.f32 %v278_v61, %v279_v13 }
  0x37   : > { %1725 = vst [vmem:[#allocation13_spill] sm:$0xff] %v1279_v15  ;;  %v346_v22 = vmul.f32 1.442695, %v336_v11  ;;  %v348_v24 = vmul.f32 1.442695, %v337_v14  ;;  %v1285_v25 = vmax.f32 %v285_v6, %v286_v16  ;;  %v323_v26 = vcombine.low %v1276_v12, %v1279_v15 }
  0x38   : > { %1726 = vst [vmem:[#allocation14_spill] sm:$0xff] %v1283_v23  ;;  %v338_v27 = vsub.f32 %v1214_v33, %v322_v17  ;;  %1054 = vpow2.f32 %v342_v18  ;;  %v1290_v28 = vmax.f32 %v292_v8, %v293_v19  ;;  %v1292_v29 = vmax.f32 %v299_v9, %v300_v20 }
  0x39   : > { %1727 = vst [vmem:[#allocation15_spill] sm:$0xff] %v1285_v25  ;;  %1056 = vpow2.f32 %v344_v21  ;;  %v324_v30 = vcombine.low %v1283_v23, %v1285_v25  ;;  %v339_v31 = vsub.f32 %v1217_v39, %v323_v26  ;;  %v1141_v35 = vmov 1966171168  }
  0x3a   : > { %1728 = vst [vmem:[#allocation16_spill] sm:$0xff] %v1290_v28  ;;  %1729 = vst [vmem:[#allocation17_spill] sm:$0xff] %v1292_v29  ;;  %1058 = vpow2.f32 %v346_v22  ;;  %v350_v32 = vmul.f32 1.442695, %v338_v27  ;;  %v325_v34 = vcombine.low %v1290_v28, %v1292_v29  ;;  %v547_v38 = vunpack.c.l.s4 %v1141_v35 }
  0x3b   : > { %1060 = vpow2.f32 %v348_v24  ;;  %v549_v46 = vlaneseq  ;;  %v340_v49 = vsub.f32 %v1220_v40, %v324_v30  ;;  %v352_v50 = vmul.f32 1.442695, %v339_v31 }
  0x3c   : > { %1062 = vpow2.f32 %v350_v32  ;;  %v341_v51 = vsub.f32 %v1223_v41, %v325_v34  ;;  %v548_v52 = vunpack.c.0.s8 %v547_v38  ;;  %v1311_v11 = vstv %s1004_s19 }
  0x3d   : > { %v1301_v53 = vshrl.u32 %v549_v46, 7  ;;  %1064 = vpow2.f32 %v352_v50  ;;  %v354_v56 = vmul.f32 1.442695, %v340_v49  ;;  %v1309_v8 = vand.u32 127, %v549_v46  ;;  %1730 = vst [vmem:[#allocation18_spill] sm:$0xff] %v1311_v11 }
  0x3e   : > { %v356_v58 = vmul.f32 1.442695, %v341_v51  ;;  %vm545_vm3 = vcmp.eq.s32.totalorder %v1383_v48, 1  ;;  %vm677_vm5 = vcmp.eq.s32.totalorder %v1383_v48, 2  ;;  %vm685_vm7 = vcmp.eq.s32.totalorder %v1383_v48, 3 }
  0x3f   : > { %v1305_v62 = vsub.s32 %v548_v52, %v1301_v53  ;;  %1066 = vpow2.f32 %v354_v56  ;;  %v704_v48 = vadd.s32 1408, %v1309_v8 }
  0x40   : > { %1068 = vpow2.f32 %v356_v58 }
  0x41   : > { %v1316_v14 = vrot.slane %v1182_v1, %v1305_v62  ;;  %v1320_v16 = vrot.slane %v1185_v2, %v1305_v62  ;;  %v1326_v21 = vrot.slane %v1188_v3, %v1305_v62  ;;  %v1332_v1 = vrot.slane %v1191_v4, %v1305_v62 }
  0x42   : > { %v1055_v54 = vpop.eup %1054  ;;  %v1336_v2 = vrot.slane %v1214_v33, %v1305_v62  ;;  %v1341_v3 = vrot.slane %v1217_v39, %v1305_v62  ;;  %v1345_v35 = vrot.slane %v1220_v40, %v1305_v62  ;;  %v1353_v39 = vrot.slane %v1223_v41, %v1305_v62 }
  0x43   : > { %v1057_v43 = vpop.eup %1056  ;;  %v366_v60 = vcombine.high %v1055_v54, %v1055_v54  ;;  %v382_v61 = vsel %vm189_vm1, %v1055_v54, 0.0  ;;  %v574_v49 = vcombine.high %v1316_v14, %v1320_v16  ;;  %v575_v51 = vcombine.high %v1326_v21, %v1332_v1 }
  0x44   : > { %v1059_v47 = vpop.eup %1058  ;;  %v367_v5 = vcombine.high %v1057_v43, %v1057_v43  ;;  %v396_v7 = vsel %vm189_vm1, %v1057_v43, 0.0  ;;  %v383_v10 = vrot.slane %v382_v61, 4 }
  0x45   : > { %v1061_v57 = vpop.eup %1060  ;;  %v368_v6 = vcombine.high %v1059_v47, %v1059_v47  ;;  %v389_v13 = vsel %vm189_vm1, %v366_v60, 0.0  ;;  %v397_v18 = vrot.slane %v396_v7, 4  ;;  %v410_v20 = vsel %vm189_vm1, %v1059_v47, 0.0 }
  0x46   : > { %v369_v9 = vcombine.high %v1061_v57, %v1061_v57  ;;  %v1063_v17 = vpop.eup %1062  ;;  %v403_v19 = vsel %vm189_vm1, %v367_v5, 0.0  ;;  %v424_v24 = vsel %vm189_vm1, %v1061_v57, 0.0  ;;  %v384_v26 = vadd.f32 %v383_v10, %v382_v61 }
  0x47   : > { %v417_v22 = vsel %vm189_vm1, %v368_v6, 0.0  ;;  %v390_v27 = vrot.slane %v389_v13, 4  ;;  %v370_v31 = vcombine.high %v1063_v17, %v1063_v17  ;;  %v404_v32 = vrot.slane %v403_v19, 4  ;;  %v1065_v4 = vpop.eup %1064 }
  0x48   : > { %v431_v30 = vsel %vm189_vm1, %v369_v9, 0.0  ;;  %v411_v34 = vrot.slane %v410_v20, 4  ;;  %v398_v38 = vadd.f32 %v397_v18, %v396_v7  ;;  %v418_v46 = vrot.slane %v417_v22, 4 }
  0x49   : > { %v425_v33 = vrot.slane %v424_v24, 4  ;;  %v432_v50 = vrot.slane %v431_v30, 4  ;;  %v385_v40 = vrot.slane %v384_v26, 2  ;;  %v391_v54 = vadd.f32 %v390_v27, %v389_v13  ;;  %v1067_v61 = vpop.eup %1066 }
  0x4a   : > { %v438_v43 = vsel %vm189_vm1, %v1063_v17, 0.0  ;;  %v371_v56 = vcombine.high %v1065_v4, %v1065_v4  ;;  %v405_v57 = vadd.f32 %v404_v32, %v403_v19  ;;  %v412_v58 = vadd.f32 %v411_v34, %v410_v20  ;;  %v1069_v9 = vpop.eup %1068 }
  0x4b   : > { %v445_v60 = vsel %vm189_vm1, %v370_v31, 0.0  ;;  %v399_v5 = vrot.slane %v398_v38, 2  ;;  %v419_v6 = vadd.f32 %v418_v46, %v417_v22  ;;  %v426_v41 = vadd.f32 %v425_v33, %v424_v24 }
  0x4c   : > { %v433_v10 = vadd.f32 %v432_v50, %v431_v30  ;;  %v439_v13 = vrot.slane %v438_v43, 4  ;;  %v1364_v17 = vrot.slane %v574_v49, %v1305_v62  ;;  %v386_v19 = vadd.f32 %v385_v40, %v384_v26 }
  0x4d   : > { %v392_v20 = vrot.slane %v391_v54, 2  ;;  %v446_v27 = vrot.slane %v445_v60, 4  ;;  %v406_v22 = vrot.slane %v405_v57, 2  ;;  %v413_v24 = vrot.slane %v412_v58, 2 }
  0x4e   : > { %v452_v32 = vsel %vm189_vm1, %v1065_v4, 0.0  ;;  %v459_v34 = vsel %vm189_vm1, %v371_v56, 0.0  ;;  %v372_v30 = vcombine.high %v1067_v61, %v1067_v61  ;;  %v400_v46 = vadd.f32 %v399_v5, %v398_v38 }
  0x4f   : > { %v420_v33 = vrot.slane %v419_v6, 2  ;;  %v427_v49 = vrot.slane %v426_v41, 2  ;;  %v373_v50 = vcombine.high %v1069_v9, %v1069_v9  ;;  %v434_v47 = vrot.slane %v433_v10, 2 }
  0x50   : > { %v440_v7 = vadd.f32 %v439_v13, %v438_v43  ;;  %v1373_v26 = vrot.slane %v575_v51, %v1305_v62  ;;  %v387_v40 = vrot.slane %v386_v19, 1  ;;  %v447_v18 = vadd.f32 %v446_v27, %v445_v60 }
  0x51   : > { %v453_v52 = vrot.slane %v452_v32, 4  ;;  %v460_v31 = vrot.slane %v459_v34, 4  ;;  %v393_v29 = vadd.f32 %v392_v20, %v391_v54  ;;  %v407_v28 = vadd.f32 %v406_v22, %v405_v57 }
  0x52   : > { %v414_v25 = vadd.f32 %v413_v24, %v412_v58  ;;  %v466_v4 = vsel %vm189_vm1, %v1067_v61, 0.0  ;;  %v401_v56 = vrot.slane %v400_v46, 1  ;;  %v421_v23 = vadd.f32 %v420_v33, %v419_v6  ;;  %v1380_v33 = vld [vmem:[%s1173_s15] sm:$0xff] }
  0x53   : > { %v428_v38 = vadd.f32 %v427_v49, %v426_v41  ;;  %v473_v5 = vsel %vm189_vm1, %v372_v30, 0.0  ;;  %v435_v15 = vadd.f32 %v434_v47, %v433_v10  ;;  %v441_v12 = vrot.slane %v440_v7, 2 }
  0x54   : > { %v480_v43 = vsel %vm189_vm1, %v1069_v9, 0.0  ;;  %v487_v51 = vsel %vm189_vm1, %v373_v50, 0.0  ;;  %v448_v13 = vrot.slane %v447_v18, 2  ;;  %v454_v60 = vadd.f32 %v453_v52, %v452_v32 }
  0x55   : > { %v461_v27 = vadd.f32 %v460_v31, %v459_v34  ;;  %v467_v54 = vrot.slane %v466_v4, 4  ;;  %v394_v57 = vrot.slane %v393_v29, 1  ;;  %v408_v58 = vrot.slane %v407_v28, 1 }
  0x56   : > { %v415_v20 = vrot.slane %v414_v25, 1  ;;  %v474_v61 = vrot.slane %v473_v5, 4  ;;  %v422_v22 = vrot.slane %v421_v23, 1  ;;  %v429_v6 = vrot.slane %v428_v38, 1 }
  0x57   : > { %v481_v41 = vrot.slane %v480_v43, 4  ;;  %v488_v24 = vrot.slane %v487_v51, 4  ;;  %v388_v47 = vadd.f32 %v387_v40, %v386_v19  ;;  %v402_v10 = vadd.f32 %v401_v56, %v400_v46 }
  0x58   : > { %v436_v30 = vrot.slane %v435_v15, 1  ;;  %v442_v9 = vadd.f32 %v441_v12, %v440_v7  ;;  %v449_v49 = vadd.f32 %v448_v13, %v447_v18  ;;  %v455_v50 = vrot.slane %v454_v60, 2 }
  0x59   : > { %v462_v52 = vrot.slane %v461_v27, 2  ;;  %v468_v31 = vadd.f32 %v467_v54, %v466_v4  ;;  %v395_v32 = vadd.f32 %v394_v57, %v393_v29  ;;  %v409_v34 = vadd.f32 %v408_v58, %v407_v28 }
  0x5a   : > { %v416_v0 = vadd.f32 %v415_v20, %v414_v25  ;;  %v475_v59 = vadd.f32 %v474_v61, %v473_v5  ;;  %v423_v45 = vadd.f32 %v422_v22, %v421_v23  ;;  %v430_v44 = vadd.f32 %v429_v6, %v428_v38 }
  0x5b   : > { %v482_v11 = vadd.f32 %v481_v41, %v480_v43  ;;  %v489_v42 = vadd.f32 %v488_v24, %v487_v51  ;;  %vm544_vm2 = vcmp.eq.s32.totalorder %v1380_v33, 1  ;;  %v437_v19 = vadd.f32 %v436_v30, %v435_v15 }
  0x5c   : > { %v443_v12 = vrot.slane %v442_v9, 1  ;;  %1070 = vlog2.f32 %v388_v47  ;;  %v656_v7 = vcombine.low %v1345_v35, %v1353_v39  ;;  %v450_v18 = vrot.slane %v449_v49, 1 }
  0x5d   : > { %v456_v46 = vadd.f32 %v455_v50, %v454_v60  ;;  %v463_v29 = vadd.f32 %v462_v52, %v461_v27  ;;  %v469_v28 = vrot.slane %v468_v31, 2  ;;  %v476_v25 = vrot.slane %v475_v59, 2 }
  0x5e   : > { %1072 = vlog2.f32 %v395_v32  ;;  %v1731_v23 = vcombine.low %v1316_v14, %v1320_v16  ;;  %v1732_v15 = vcombine.low %v1326_v21, %v1332_v1  ;;  %vm676_vm4 = vcmp.eq.s32.totalorder %v1380_v33, 2 }
  0x5f   : > { %v483_v56 = vrot.slane %v482_v11, 2  ;;  %v490_v38 = vrot.slane %v489_v42, 2  ;;  %1074 = vlog2.f32 %v402_v10  ;;  %v1733_v5 = vcombine.high %v1336_v2, %v1341_v3 }
  0x60   : > { %v646_v40 = vrot.slane %v1731_v23, %v1305_v62  ;;  %v653_v4 = vrot.slane %v1732_v15, %v1305_v62  ;;  %1076 = vlog2.f32 %v409_v34  ;;  %v1734_v14 = vcombine.high %v1345_v35, %v1353_v39 }
  0x61   : > { %v1402_v43 = vrot.slane %v1733_v5, %v1305_v62  ;;  %v1735_v21 = vcombine.low %v1336_v2, %v1341_v3  ;;  %v670_v51 = vrot.slane %v656_v7, %v1305_v62  ;;  %v444_v13 = vadd.f32 %v443_v12, %v442_v9 }
  0x62   : > { %v1408_v16 = vrot.slane %v1734_v14, %v1305_v62  ;;  %v457_v60 = vrot.slane %v456_v46, 1  ;;  %v470_v27 = vadd.f32 %v469_v28, %v468_v31  ;;  %1078 = vlog2.f32 %v416_v0 }
  0x63   : > { %v663_v1 = vrot.slane %v1735_v21, %v1305_v62  ;;  %vm684_vm6 = vcmp.eq.s32.totalorder %v1380_v33, 3  ;;  %v451_v54 = vadd.f32 %v450_v18, %v449_v49  ;;  %1080 = vlog2.f32 %v423_v45 }
  0x64   : > { %v590_v35 = vcombine.low %v1364_v17, %v1373_v26  ;;  %v654_v39 = vcombine.low %v646_v40, %v653_v4  ;;  %v464_v57 = vrot.slane %v463_v29, 1  ;;  %v477_v58 = vadd.f32 %v476_v25, %v475_v59 }
  0x65   : > { %v484_v2 = vadd.f32 %v483_v56, %v482_v11  ;;  %1082 = vlog2.f32 %v430_v44  ;;  %v491_v62 = vadd.f32 %v490_v38, %v489_v42  ;;  %v635_v3 = vcombine.low %v1402_v43, %v1408_v16 }
  0x66   : > { %1084 = vlog2.f32 %v437_v19  ;;  %v671_v0 = vcombine.low %v663_v1, %v670_v51  ;;  %v458_v20 = vadd.f32 %v457_v60, %v456_v46  ;;  %v471_v61 = vrot.slane %v470_v27, 1  ;;  %v1071_v22 = vpop.eup %1070 }
  0x67   : > { %1086 = vlog2.f32 %v444_v13  ;;  %v678_v45 = vcombine.high %v646_v40, %v653_v4  ;;  %v674_v6 = vsel %vm544_vm2, %v590_v35, %v654_v39  ;;  %v1425_v59 = vadd.s32 128, %v1309_v8 }
  0x68   : > { %v780_v44 = vsub.s32 0, %v1301_v53  ;;  %v465_v11 = vadd.f32 %v464_v57, %v463_v29  ;;  %v478_v42 = vrot.slane %v477_v58, 1  ;;  %1088 = vlog2.f32 %v451_v54  ;;  %v1073_v24 = vpop.eup %1072 }
  0x69   : > { %v679_v41 = vcombine.high %v663_v1, %v670_v51  ;;  %v485_v47 = vrot.slane %v484_v2, 1  ;;  %v492_v10 = vrot.slane %v491_v62, 1  ;;  %v675_v30 = vsel %vm545_vm3, %v635_v3, %v671_v0  ;;  %v1075_v49 = vpop.eup %1074  ;;  %v1736_v3 = vld [vmem:[#allocation6_spill] sm:$0xff] }
  0x6a   : > { %v686_v9 = vcombine.high %v1364_v17, %v1373_v26  ;;  %v472_v50 = vadd.f32 %v471_v61, %v470_v27  ;;  %v495_v52 = vmul.f32 0.6931472, %v1071_v22  ;;  %1090 = vlog2.f32 %v458_v20  ;;  %v1077_v32 = vpop.eup %1076  ;;  %v1738_v22 = vld [vmem:[#allocation7_spill] sm:$0xff] }
  0x6b   : > { %v682_v31 = vsel %vm676_vm4, %v678_v45, %v674_v6  ;;  %v687_v34 = vcombine.high %v1402_v43, %v1408_v16  ;;  %v695_v19 = vadd.s32 256, %v1309_v8  ;;  %v696_v12 = vadd.s32 384, %v1309_v8 }
  0x6c   : > { %v697_v7 = vadd.s32 512, %v1309_v8  ;;  %v1079_v18 = vpop.eup %1078  ;;  %v479_v46 = vadd.f32 %v478_v42, %v477_v58  ;;  %v497_v17 = vmul.f32 0.6931472, %v1073_v24  ;;  %1092 = vlog2.f32 %v465_v11  ;;  %v1739_v24 = vld [vmem:[#allocation8_spill] sm:$0xff] }
  0x6d   : > { %v683_v26 = vsel %vm677_vm5, %v679_v41, %v675_v30  ;;  %v1081_v29 = vpop.eup %1080  ;;  %v486_v28 = vadd.f32 %v485_v47, %v484_v2  ;;  %v493_v25 = vadd.f32 %v492_v10, %v491_v62  ;;  %v1443_v23 = vsel %vm684_vm6, %v686_v9, %v682_v31  ;;  %v1740_v10 = vld [vmem:[#allocation9_spill] sm:$0xff] }
  0x6e   : > { %v698_v40 = vadd.s32 640, %v1309_v8  ;;  %v499_v4 = vmul.f32 0.6931472, %v1075_v49  ;;  %1094 = vlog2.f32 %v472_v50  ;;  %v1447_v56 = vadd.f32 %v495_v52, %v1235_v55  ;;  %v1741_v50 = vld [vmem:[#allocation10_spill] sm:$0xff] }
  0x6f   : > { %v1083_v15 = vpop.eup %1082  ;;  %v699_v38 = vadd.s32 768, %v1309_v8  ;;  %v501_v43 = vmul.f32 0.6931472, %v1077_v32  ;;  %v1452_v14 = vsel %vm685_vm7, %v687_v34, %v683_v26  ;;  %v700_v33 = vadd.s32 896, %v1309_v8 }
  0x70   : > { %v1085_v5 = vpop.eup %1084  ;;  %v701_v16 = vadd.s32 1024, %v1309_v8  ;;  %v503_v1 = vmul.f32 0.6931472, %v1079_v18  ;;  %1096 = vlog2.f32 %v479_v46  ;;  %v1457_v51 = vadd.f32 %v497_v17, %v1240_v63  ;;  %v1742_v46 = vld [vmem:[#allocation11_spill] sm:$0xff] }
  0x71   : > { %v1087_v21 = vpop.eup %1086  ;;  %v702_v55 = vadd.s32 1152, %v1309_v8  ;;  %v505_v13 = vmul.f32 0.6931472, %v1081_v29  ;;  %1098 = vlog2.f32 %v486_v28  ;;  %v703_v60 = vadd.s32 1280, %v1309_v8 }
  0x72   : > { %v1089_v27 = vpop.eup %1088  ;;  %v507_v54 = vmul.f32 0.6931472, %v1083_v15  ;;  %v509_v35 = vmul.f32 0.6931472, %v1085_v5  ;;  %1100 = vlog2.f32 %v493_v25  ;;  %v1463_v39 = vadd.f32 %v499_v4, %v1249_v36  ;;  %v1737_v36 = vld [vmem:[#allocation18_spill] sm:$0xff] }
  0x73   : > { %v511_v57 = vmul.f32 0.6931472, %v1087_v21  ;;  %v1466_v58 = vadd.f32 %v501_v43, %v1251_v37  ;;  %v705_v63 = vadd.s32 1536, %v1309_v8  ;;  %v1470_v2 = vadd.s32 1664, %v1309_v8  ;;  %v1743_v43 = vld [vmem:[#allocation12_spill] sm:$0xff] }
  0x74   : > { %v1091_v62 = vpop.eup %1090  ;;  %v1473_v0 = vadd.f32 %v503_v1, %v1736_v3  ;;  %v1476_v20 = vadd.s32 1792, %v1309_v8  ;;  %v1479_v61 = vadd.s32 1920, %v1309_v8  ;;  %v711_v45 = vadd.s32 %v1737_v36, %v1309_v8 }
  0x75   : > { %v513_v37 = vmul.f32 0.6931472, %v1089_v27  ;;  %v1484_v6 = vadd.f32 %v505_v13, %v1738_v22  ;;  %v712_v11 = vadd.s32 %v1737_v36, %v1425_v59  ;;  %v713_v42 = vadd.s32 %v1737_v36, %v695_v19 }
  0x76   : > { %v1093_v41 = vpop.eup %1092  ;;  %v1490_v47 = vadd.f32 %v507_v54, %v1739_v24  ;;  %v1493_v30 = vadd.f32 %v509_v35, %v1740_v10  ;;  %v714_v9 = vadd.s32 %v1737_v36, %v696_v12  ;;  %v715_v8 = vadd.s32 %v1737_v36, %v697_v7 }
  0x77   : > { %v515_v49 = vmul.f32 0.6931472, %v1091_v62  ;;  %v1498_v52 = vadd.f32 %v511_v57, %v1741_v50  ;;  %v716_v31 = vadd.s32 %v1737_v36, %v698_v40  ;;  %v1502_v59 = vadd.s32 %v1737_v36, %v699_v38 }
  0x78   : > { %v1095_v32 = vpop.eup %1094  ;;  %v1505_v34 = vadd.s32 %v1737_v36, %v700_v33  ;;  %v784_v19 = vsub.s32 1, %v1301_v53  ;;  %v788_v18 = vsub.s32 2, %v1301_v53  ;;  %v792_v12 = vsub.s32 3, %v1301_v53 }
  0x79   : > { %v517_v7 = vmul.f32 0.6931472, %v1093_v41  ;;  %v1511_v17 = vadd.f32 %v513_v37, %v1742_v46  ;;  %v1514_v26 = vadd.s32 %v1737_v36, %v701_v16  ;;  %v1517_v29 = vadd.s32 %v1737_v36, %v702_v55 }
  0x7a   : > { %v1097_v28 = vpop.eup %1096  ;;  %v781_v25 = vrot.slane %v1443_v23, %v780_v44  ;;  %v785_v40 = vrot.slane %v1443_v23, %v784_v19  ;;  %v789_v15 = vrot.slane %v1443_v23, %v788_v18  ;;  %v796_v4 = vsub.s32 4, %v1301_v53 }
  0x7b   : > { %v1099_v38 = vpop.eup %1098  ;;  %v519_v5 = vmul.f32 0.6931472, %v1095_v32  ;;  %v1530_v33 = vadd.f32 %v515_v49, %v1743_v43  ;;  %v1533_v16 = vadd.s32 %v1737_v36, %v703_v60  ;;  %vm727_vm8 = vcmp.lt.s32.totalorder %v711_v45, 6588 }
  0x7c   : > { %v1535_v21 = vpop.eup %1100  ;;  %vm728_vm9 = vcmp.lt.s32.totalorder %v712_v11, 6588  ;;  %vm729_vm10 = vcmp.lt.s32.totalorder %v713_v42, 6588  ;;  %v793_v1 = vrot.slane %v1443_v23, %v792_v12  ;;  %v800_v55 = vsub.s32 5, %v1301_v53 }
  0x7d   : > { %v1542_v13 = vadd.s32 %v1737_v36, %v704_v48  ;;  %v1545_v27 = vadd.s32 %v1737_v36, %v705_v63  ;;  %vm730_vm11 = vcmp.lt.s32.totalorder %v714_v9, 6588  ;;  %v804_v60 = vsub.s32 6, %v1301_v53 }
  0x7e   : > { %v797_v54 = vrot.slane %v1443_v23, %v796_v4  ;;  %v858_v35 = vsub.f32 %v1447_v56, %v781_v25  ;;  %v859_v57 = vsub.f32 %v1457_v51, %v785_v40  ;;  %v860_v62 = vsub.f32 %v1463_v39, %v789_v15  ;;  %v1744_v39 = vld [vmem:[#allocation13_spill] sm:$0xff] }
  0x7f   : > { %v1554_v3 = vmul.f32 0.6931472, %v1097_v28  ;;  %v1142_v48 = vmov 0.0   ;;  %vm731_vm12 = vcmp.lt.s32.totalorder %v715_v8, 6588  ;;  %v801_v11 = vrot.slane %v1443_v23, %v800_v55 }
  0x80   : > { %v1005_v63 = vsel %vm727_vm8, 1.0, %v1142_v48  ;;  %v1006_v37 = vsel %vm728_vm9, 1.0, %v1142_v48  ;;  %v1007_v22 = vsel %vm729_vm10, 1.0, %v1142_v48  ;;  %v808_v56 = vsub.s32 7, %v1301_v53 }
  0x81   : > { %v861_v51 = vsub.f32 %v1466_v58, %v793_v1  ;;  %v1566_v42 = vadd.f32 %v517_v7, %v1744_v39  ;;  %vm732_vm13 = vcmp.lt.s32.totalorder %v716_v31, 6588  ;;  %v1008_v45 = vsel %vm730_vm11, 1.0, %v1142_v48  ;;  %v1746_v39 = vld [vmem:[#allocation15_spill] sm:$0xff] }
  0x82   : > { %v805_v41 = vrot.slane %v1443_v23, %v804_v60  ;;  %v862_v24 = vsub.f32 %v1473_v0, %v797_v54  ;;  %v874_v10 = vmul.f32 %v1005_v63, %v858_v35  ;;  %v875_v8 = vmul.f32 %v1006_v37, %v859_v57  ;;  %v1745_v54 = vld [vmem:[#allocation14_spill] sm:$0xff] }
  0x83   : > { %v876_v49 = vmul.f32 %v1007_v22, %v860_v62  ;;  %v1576_v50 = vadd.s32 %v1737_v36, %v1470_v2  ;;  %v1580_v58 = vadd.s32 %v1737_v36, %v1476_v20  ;;  %vm733_vm14 = vcmp.lt.s32.totalorder %v1502_v59, 6588 }
  0x84   : > { %v1009_v9 = vsel %vm731_vm12, 1.0, %v1142_v48  ;;  %vm734_vm15 = vcmp.lt.s32.totalorder %v1505_v34, 6588  ;;  %v809_v0 = vrot.slane %v1443_v23, %v808_v56  ;;  %v863_v31 = vsub.f32 %v1484_v6, %v801_v11 }
  0x85   : > { %v877_v32 = vmul.f32 %v1008_v45, %v861_v51  ;;  %v1010_v2 = vsel %vm732_vm13, 1.0, %v1142_v48  ;;  %v813_v20 = vrot.slane %v1452_v14, %v780_v44  ;;  %v864_v7 = vsub.f32 %v1490_v47, %v805_v41 }
  0x86   : > { %v878_v46 = vmul.f32 %v1009_v9, %v862_v24  ;;  %v891_v28 = vsel %vm890_vm0, %v874_v10, 0.0  ;;  %v892_v25 = vsel %vm890_vm0, %v875_v8, 0.0  ;;  %v894_v40 = vsel %vm890_vm0, %v876_v49, 0.0  ;;  %v1747_v10 = vld [vmem:[#allocation16_spill] sm:$0xff] }
  0x87   : > { %v523_v23 = vmul.f32 0.6931472, %v1099_v38  ;;  %vm735_vm1 = vcmp.lt.s32.totalorder %v1514_v26, 6588  ;;  %v1011_v6 = vsel %vm733_vm14, 1.0, %v1142_v48  ;;  %v893_v15 = vadd.f32 %v892_v25, %v891_v28 }
  0x88   : > { %v817_v44 = vrot.slane %v1452_v14, %v784_v19  ;;  %v865_v47 = vsub.f32 %v1493_v30, %v809_v0  ;;  %v879_v43 = vmul.f32 %v1010_v2, %v863_v31  ;;  %v896_v1 = vsel %vm890_vm0, %v877_v32, 0.0  ;;  %v1748_v0 = vld [vmem:[#allocation17_spill] sm:$0xff] }
  0x89   : > { %v538_v35 = vadd.f32 %v519_v5, %v1745_v54  ;;  %vm736_vm2 = vcmp.lt.s32.totalorder %v1517_v29, 6588  ;;  %v1012_v38 = vsel %vm734_vm15, 1.0, %v1142_v48  ;;  %v895_v59 = vadd.f32 %v894_v40, %v893_v15 }
  0x8a   : > { %v821_v57 = vrot.slane %v1452_v14, %v788_v18  ;;  %v866_v19 = vsub.f32 %v1498_v52, %v813_v20  ;;  %v880_v62 = vmul.f32 %v1011_v6, %v864_v7  ;;  %v898_v30 = vsel %vm890_vm0, %v878_v46, 0.0 }
  0x8b   : > { %v726_v63 = vadd.s32 %v1737_v36, %v1479_v61  ;;  %vm737_vm3 = vcmp.lt.s32.totalorder %v1533_v16, 6588  ;;  %v1013_v34 = vsel %vm735_vm1, 1.0, %v1142_v48  ;;  %v897_v5 = vadd.f32 %v896_v1, %v895_v59 }
  0x8c   : > { %v825_v37 = vrot.slane %v1452_v14, %v792_v12  ;;  %v867_v18 = vsub.f32 %v1511_v17, %v817_v44  ;;  %v881_v52 = vmul.f32 %v1012_v38, %v865_v47  ;;  %v900_v22 = vsel %vm890_vm0, %v879_v43, 0.0 }
  0x8d   : > { %v525_v11 = vmul.f32 0.6931472, %v1535_v21  ;;  %vm738_vm4 = vcmp.lt.s32.totalorder %v1542_v13, 6588  ;;  %v1014_v61 = vsel %vm736_vm2, 1.0, %v1142_v48  ;;  %v899_v36 = vadd.f32 %v898_v30, %v897_v5 }
  0x8e   : > { %v829_v26 = vrot.slane %v1452_v14, %v796_v4  ;;  %v868_v12 = vsub.f32 %v1530_v33, %v821_v57  ;;  %v882_v51 = vmul.f32 %v1013_v34, %v866_v19  ;;  %v902_v17 = vsel %vm890_vm0, %v880_v62, 0.0 }
  0x8f   : > { %v539_v45 = vadd.f32 %v1554_v3, %v1746_v39  ;;  %vm739_vm5 = vcmp.lt.s32.totalorder %v1545_v27, 6588  ;;  %v1015_v29 = vsel %vm737_vm3, 1.0, %v1142_v48  ;;  %v901_v21 = vadd.f32 %v900_v22, %v899_v36 }
  0x90   : > { %v833_v41 = vrot.slane %v1452_v14, %v800_v55  ;;  %v869_v4 = vsub.f32 %v1566_v42, %v825_v37  ;;  %v883_v33 = vmul.f32 %v1014_v61, %v867_v18  ;;  %v904_v24 = vsel %vm890_vm0, %v881_v52, 0.0  ;;  %v775_v18 = vld [vmem:[#allocation2] sm:$0x1] }
  0x91   : > { %v540_v8 = vadd.f32 %v523_v23, %v1747_v10  ;;  %vm740_vm6 = vcmp.lt.s32.totalorder %v1576_v50, 6588  ;;  %v1016_v3 = vsel %vm738_vm4, 1.0, %v1142_v48  ;;  %v903_v16 = vadd.f32 %v902_v17, %v901_v21 }
  0x92   : > { %v837_v49 = vrot.slane %v1452_v14, %v804_v60  ;;  %v870_v9 = vsub.f32 %v538_v35, %v829_v26  ;;  %v884_v55 = vmul.f32 %v1015_v29, %v868_v12  ;;  %v906_v42 = vsel %vm890_vm0, %v882_v51, 0.0 }
  0x93   : > { %v541_v31 = vadd.f32 %v525_v11, %v1748_v0  ;;  %vm741_vm7 = vcmp.lt.s32.totalorder %v1580_v58, 6588  ;;  %v1017_v50 = vsel %vm739_vm5, 1.0, %v1142_v48  ;;  %v905_v32 = vadd.f32 %v904_v24, %v903_v16 }
  0x94   : > { %v841_v13 = vrot.slane %v1452_v14, %v808_v56  ;;  %v871_v2 = vsub.f32 %v539_v45, %v833_v41  ;;  %v885_v20 = vmul.f32 %v1016_v3, %v869_v4  ;;  %v908_v60 = vsel %vm890_vm0, %v883_v33, 0.0 }
  0x95   : > { %v1018_v7 = vsel %vm740_vm6, 1.0, %v1142_v48  ;;  %v907_v46 = vadd.f32 %v906_v42, %v905_v32  ;;  %vm742_vm8 = vcmp.lt.s32.totalorder %v726_v63, 6588  ;;  %v872_v28 = vsub.f32 %v540_v8, %v837_v49 }
  0x96   : > { %v886_v25 = vmul.f32 %v1017_v50, %v870_v9  ;;  %v910_v58 = vsel %vm890_vm0, %v884_v55, 0.0  ;;  %v1019_v27 = vsel %vm741_vm7, 1.0, %v1142_v48  ;;  %v873_v23 = vsub.f32 %v541_v31, %v841_v13 }
  0x97   : > { %v909_v40 = vadd.f32 %v908_v60, %v907_v46  ;;  %v887_v6 = vmul.f32 %v1018_v7, %v871_v2  ;;  %v912_v53 = vsel %vm890_vm0, %v885_v20, 0.0  ;;  %v1020_v14 = vsel %vm742_vm8, 1.0, %v1142_v48 }
  0x98   : > { %v888_v15 = vmul.f32 %v1019_v27, %v872_v28  ;;  %v914_v44 = vsel %vm890_vm0, %v886_v25, 0.0  ;;  %v889_v43 = vmul.f32 %v1020_v14, %v873_v23  ;;  %vm933_vm9 = vcmask 0  }
  0x99   : > { %v911_v56 = vadd.f32 %v910_v58, %v909_v40  ;;  %v916_v1 = vsel %vm890_vm0, %v887_v6, 0.0 }
  0x9a   : > { %v918_v35 = vsel %vm890_vm0, %v888_v15, 0.0  ;;  %v920_v59 = vsel %vm890_vm0, %v889_v43, 0.0 }
  0x9b   : > { %v913_v47 = vadd.f32 %v912_v53, %v911_v56 }
  0x9d   : > { %v915_v54 = vadd.f32 %v914_v44, %v913_v47 }
  0x9f   : > { %v917_v38 = vadd.f32 %v916_v1, %v915_v54 }
  0xa1   : > { %v919_v57 = vadd.f32 %v918_v35, %v917_v38 }
  0xa3   : > { %v921_v19 = vadd.f32 %v920_v59, %v919_v57 }
  0xa5   : > { %922 = vadd.xlane.f32.xlu0 %v921_v19 }
 0x132   : > { %v923_v62 = vpop.xlane.xlu0 %922 }
 0x133   : > { %v924_v30 = vrot.slane %v923_v62, 4 }
 0x135   : > { %v925_v48 = vadd.f32 %v924_v30, %v923_v62 }
 0x137   : > { %v926_v63 = vrot.slane %v925_v48, 2 }
 0x139   : > { %v927_v34 = vadd.f32 %v926_v63, %v925_v48 }
 0x13b   : > { %v928_v5 = vrot.slane %v927_v34, 1 }
 0x13d   : > { %v929_v37 = vadd.f32 %v928_v5, %v927_v34 }
 0x13f   : > { %1026 = vpush %v929_v37 }
 0x16e   : > { %938 = sbr.rel (%p1021_p5) target bundleno = 381 (0x17d), region = 36 }
 0x170   : > { %s1027_s20 = spop %1026 }
 0x171   : > { %v931_v52 = vstv %s1027_s20 }
 0x172   : > { %v932_v22 = vadd.f32 %v931_v52, %v775_v18 }
 0x174   : > { %934 = vst.msk [vmem:[#allocation2] sm:$0x1] %vm933_vm9, %v932_v22 }
 0x17b   : > { %v939_v11 = vld [vmem:[#allocation2] sm:$0x1] }
 0x17c   : > { %940 = vst.msk [vmem:[#allocation3] sm:$0x1] %vm933_vm9, %v939_v11 }
 0x17d PF: > { %p1032_p6 = scmp.eq.s32.totalorder %s1165_s10, 3  ;;  %s1143_s21 = smov [#allocation3]  }
 0x17e   : > { %s948_s22 = sshll.u32 %s1143_s21, 4  ;;  %s949_s22 = int_to_ptr.vmem [resolvable:$true] %s948_s22 }
 0x17f   : > { %s1102_s23 = scalar_lea.vmem %s949_s22, 16  ;;  %s1108_s24 = scalar_lea.vmem %s949_s22, 32 }
 0x180   : > { %p1103_p7 = scmp.ne.s32.totalorder %s949_s22, %s1102_s23  ;;  %p1109_p10 = scmp.lt.s32.totalorder %s949_s22, %s949_s22 }
 0x181   : > { %p1110_p11 = scmp.lt.s32.totalorder %s1108_s24, %s1102_s23 }
 0x182   : > { %p1104_p8 = pnand %p1103_p7, %p1032_p6 }
 0x183   : > { %p1111_p12 = por %p1110_p11, %p1109_p10 }
 0x184   : > { %p1105_p9 = pneg %p1104_p8 }
 0x186   : > { %p1112_p13 = pnand %p1111_p12, %p1105_p9 }
 0x188   : > { %1115 = shalt.err (!%p1112_p13)
}
 0x189   : > { %s1116_s27 = scalar_lea.hbm %s1704_s2, 16 }
 0x18a   : > { %p1117_p0 = scmp.ne.s32.totalorder %s1704_s2, %s1116_s27  ;;  %p1122_p3 = scmp.lt.u32.totalorder %s1116_s27, %s1704_s2 }
 0x18c   : > { %p1118_p1 = pnand %p1117_p0, %p1032_p6 }
 0x18e   : > { %p1119_p2 = pneg %p1118_p1 }
 0x190   : > { %p1124_p4 = pnand %p1122_p3, %p1119_p2 }
 0x192   : > { %1127 = shalt.err (!%p1124_p4)
}
 0x193   : > { %1029 = dma.vmem_to_hbm [thread:$0]  (%p1032_p6), %s949_s22, 16, %s1704_s2, [#allocation4]  }
 0x194   : > { %1133 = dma.done.wait (%p1032_p6), [#allocation4], 16  }
 0x195   : > { %1135 = vsyncadd (%p1032_p6), [#allocation4], 4294967280 }
 0x196 PF: > { %s13_s9 = sadd.s32 1, %s1138_s9  }
 0x197   : > { %p10_p5 = scmp.ge.s32.totalorder %s13_s9, 6  }
 0x199   :  { %12 = sbr.rel (!%p10_p5) target bundleno = 1 (0x1), region = 66 }
 0x1a0   :  { %961 = vsyncpa [#allocation4], 1 }
 0x1a1   :  { %963 = vsyncpa [#allocation4 + $0x1], 1 }

// kernel: multibox_loss_forward.3
= control target key start
LH: loop header
LB: loop body
LE: loop exit
PB: predicated region body
PF: predicated region fallthrough
CT: control target
= control target key end

     0   :  { %vm33_vm0 = vcmask 1043456   ;;  %s374_s0 = inlined_call_operand.vmem [shape: f32[4,256], index: 0, kind: input, shape index: {}]   ;;  %s375_s1 = inlined_call_operand.vmem [shape: s32[1,256], index: 1, kind: input, shape index: {}]   ;;  %s376_s2 = inlined_call_operand.vmem [shape: f32[1,256], index: 2, kind: input, shape index: {}]   ;;  %s377_s3 = inlined_call_operand.vmem [shape: f32[4,256], index: 3, kind: input, shape index: {}]   ;;  %s378_s4 = inlined_call_operand.vmem [shape: f32[4,256], index: 4, kind: input, shape index: {}]   ;;  %s379_s5 = inlined_call_operand.vmem [shape: f32[1,256], index: 5, kind: output, shape index: {0}]   ;;  %s380_s6 = inlined_call_operand.hbm [shape: f32[1,1], index: 6, kind: output, shape index: {1}]  }
   0x1   :  { %v308_v0 = vld [vmem:[%s374_s0] sm:$0xff] }
   0x2   :  { %v31_v1 = vcombine.high %v308_v0, %v308_v0  ;;  %v34_v2 = vsel %vm33_vm0, %v308_v0, -inf  ;;  %v149_v3 = vld [vmem:[%s377_s3] sm:$0xff] }
   0x3   :  { %v150_v4 = vld [vmem:[%s378_s4] sm:$0xff]  ;;  %v35_v5 = vrot.slane %v34_v2, 4 }
   0x4   :  { %12 = vsyncpa [#allocation4], 0  ;;  %v41_v6 = vsel %vm33_vm0, %v31_v1, -inf  ;;  %v151_v7 = vsub.f32 %v149_v3, %v150_v4  ;;  %v83_v14 = vlaneseq  ;;  %v175_v36 = vld [vmem:[%s376_s2] sm:$0x3]  ;;  %vm190_vm2 = vcmask 1040384  }
   0x5   :  { %v36_v8 = vmax.f32 %v34_v2, %v35_v5  ;;  %v42_v9 = vrot.slane %v41_v6, 4  ;;  %v267_v50 = vmov 1966171168   ;;  %vm27_vm6 = vcmask 0   ;;  %s269_s29 = smov [#allocation3]  }
   0x6   :  { %v152_v10 = vand.u32 2147483647, %v151_v7  ;;  %v154_v11 = vmul.f32 0.5, %v151_v7  ;;  %v323_v24 = vshrl.u32 %v83_v14, 7  ;;  %v81_v51 = vunpack.c.l.s4 %v267_v50  ;;  %s220_s30 = sshll.u32 %s269_s29, 4  ;;  %s221_s30 = int_to_ptr.vmem [resolvable:$true] %s220_s30 }
   0x7   :  { %v37_v12 = vrot.slane %v36_v8, 2  ;;  %v43_v13 = vmax.f32 %v41_v6, %v42_v9  ;;  %vm146_vm7 = vcmp.lt.s32.totalorder %v83_v14, 256  ;;  %s247_s7 = scalar_lea.vmem %s221_s30, 32  ;;  %p248_p1 = scmp.lt.s32.totalorder %s221_s30, %s221_s30 }
   0x8   :  { %vm153_vm1 = vcmp.lt.f32.partialorder %v152_v10, 1.0  ;;  %v155_v15 = vmul.f32 %v154_v11, %v151_v7  ;;  %v230_v16 = vadd.f32 -0.5, %v152_v10  ;;  %v116_v32 = vsub.s32 0, %v323_v24  ;;  %v78_v10 = vld [vmem:[%s375_s1] sm:$0x3] }
   0x9   :  { %v38_v17 = vmax.f32 %v36_v8, %v37_v12  ;;  %v44_v18 = vrot.slane %v43_v13, 2  ;;  %v120_v37 = vsub.s32 1, %v323_v24  ;;  %v82_v55 = vunpack.c.0.s8 %v81_v51 }
   0xa   :  { %v157_v19 = vsel %vm153_vm1, %v155_v15, %v230_v16  ;;  %v180_v43 = vrot.slane %v175_v36, %v116_v32  ;;  %vm79_vm3 = vcmp.eq.s32.totalorder %v78_v10, 1  ;;  %vm105_vm4 = vcmp.eq.s32.totalorder %v78_v10, 2 }
   0xb   :  { %v39_v20 = vrot.slane %v38_v17, 1  ;;  %v45_v21 = vmax.f32 %v43_v13, %v44_v18  ;;  %v159_v22 = vcombine.high %v157_v19, %v157_v19  ;;  %v161_v23 = vsel %vm33_vm0, %v157_v19, 0.0 }
   0xc   :  { %v162_v25 = vrot.slane %v161_v23, 4  ;;  %v184_v47 = vrot.slane %v175_v36, %v120_v37  ;;  %v85_v58 = vsub.s32 %v82_v55, %v323_v24  ;;  %vm109_vm5 = vcmp.eq.s32.totalorder %v78_v10, 3 }
   0xd   :  { %v325_v26 = vmax.f32 %v38_v17, %v39_v20  ;;  %v46_v27 = vrot.slane %v45_v21, 1  ;;  %v168_v28 = vsel %vm33_vm0, %v159_v22, 0.0 }
   0xe   :  { %v163_v29 = vadd.f32 %v162_v25, %v161_v23  ;;  %v169_v30 = vrot.slane %v168_v28, 4  ;;  %v86_v2 = vrot.slane %v308_v0, %v85_v58  ;;  %v268_v25 = vmov 0.0  }
   0xf   :  { %v328_v31 = vmax.f32 %v45_v21, %v46_v27  ;;  %28 = vst.msk [vmem:[#allocation2] sm:$0x1] %vm27_vm6, %v268_v25 }
  0x10   :  { %v164_v33 = vrot.slane %v163_v29, 2  ;;  %v170_v34 = vadd.f32 %v169_v30, %v168_v28  ;;  %v87_v7 = vcombine.high %v86_v2, %v86_v2  ;;  %v94_v11 = vrot.slane %v86_v2, %v85_v58 }
  0x11   :  { %v50_v35 = vcombine.low %v325_v26, %v328_v31 }
  0x12   :  { %v165_v38 = vadd.f32 %v164_v33, %v163_v29  ;;  %v171_v39 = vrot.slane %v170_v34, 2  ;;  %v101_v15 = vrot.slane %v87_v7, %v85_v58  ;;  %v106_v17 = vcombine.high %v94_v11, %v94_v11 }
  0x13   :  { %v52_v40 = vsub.f32 %v308_v0, %v50_v35 }
  0x14   :  { %v166_v41 = vrot.slane %v165_v38, 1  ;;  %v172_v42 = vadd.f32 %v171_v39, %v170_v34  ;;  %v104_v0 = vsel %vm79_vm3, %v101_v15, %v94_v11  ;;  %v110_v18 = vcombine.high %v101_v15, %v101_v15 }
  0x15   :  { %v53_v44 = vmul.f32 1.442695, %v52_v40  ;;  %v108_v19 = vsel %vm105_vm4, %v106_v17, %v104_v0 }
  0x16   :  { %v167_v45 = vadd.f32 %v166_v41, %v165_v38  ;;  %v173_v46 = vrot.slane %v172_v42, 1  ;;  %v112_v20 = vsel %vm109_vm5, %v110_v18, %v108_v19 }
  0x17   :  { %237 = vpow2.f32 %v53_v44  ;;  %v117_v23 = vrot.slane %v112_v20, %v116_v32  ;;  %v121_v30 = vrot.slane %v112_v20, %v120_v37 }
  0x18   :  { %v174_v48 = vadd.f32 %v173_v46, %v172_v42  ;;  %v187_v49 = vmul.f32 %v180_v43, %v167_v45 }
  0x1a   :  { %v188_v52 = vmul.f32 %v184_v47, %v174_v48  ;;  %v191_v53 = vsel %vm190_vm2, %v187_v49, 0.0 }
  0x1c   :  { %v192_v54 = vsel %vm190_vm2, %v188_v52, 0.0 }
  0x1d   :  { %v193_v56 = vadd.f32 %v192_v54, %v191_v53 }
  0x1f   :  { %194 = vadd.xlane.f32.xlu0 %v193_v56 }
  0x21   :  { %v238_v57 = vpop.eup %237 }
  0x22   :  { %v56_v59 = vcombine.high %v238_v57, %v238_v57  ;;  %v58_v60 = vsel %vm33_vm0, %v238_v57, 0.0 }
  0x23   :  { %v59_v61 = vrot.slane %v58_v60, 4 }
  0x24   :  { %v65_v62 = vsel %vm33_vm0, %v56_v59, 0.0 }
  0x25   :  { %v60_v63 = vadd.f32 %v59_v61, %v58_v60  ;;  %v66_v1 = vrot.slane %v65_v62, 4 }
  0x27   :  { %v61_v3 = vrot.slane %v60_v63, 2  ;;  %v67_v4 = vadd.f32 %v66_v1, %v65_v62 }
  0x29   :  { %v62_v5 = vadd.f32 %v61_v3, %v60_v63  ;;  %v68_v6 = vrot.slane %v67_v4, 2 }
  0x2b   :  { %v63_v8 = vrot.slane %v62_v5, 1  ;;  %v69_v9 = vadd.f32 %v68_v6, %v67_v4 }
  0x2d   :  { %v64_v12 = vadd.f32 %v63_v8, %v62_v5  ;;  %v70_v13 = vrot.slane %v69_v9, 1 }
  0x2f   :  { %v71_v16 = vadd.f32 %v70_v13, %v69_v9  ;;  %239 = vlog2.f32 %v64_v12 }
  0x31   :  { %241 = vlog2.f32 %v71_v16 }
  0x39   :  { %v240_v21 = vpop.eup %239 }
  0x3a   :  { %v73_v22 = vmul.f32 0.6931472, %v240_v21 }
  0x3b   :  { %v242_v27 = vpop.eup %241 }
  0x3c   :  { %v75_v28 = vmul.f32 0.6931472, %v242_v27  ;;  %v76_v29 = vadd.f32 %v73_v22, %v325_v26 }
  0x3e   :  { %v77_v33 = vadd.f32 %v75_v28, %v328_v31  ;;  %v124_v34 = vsub.f32 %v76_v29, %v117_v23  ;;  %v189_v31 = vld [vmem:[#allocation2] sm:$0x1] }
  0x40   :  { %v125_v35 = vsub.f32 %v77_v33, %v121_v30 }
  0x42   :  { %v128_v36 = vcombine.low %v124_v34, %v125_v35 }
  0x44   :  { %v135_v38 = vrot.slane %v128_v36, %v85_v58 }
  0x46   :  { %v142_v39 = vrot.slane %v135_v38, %v85_v58 }
  0x48   :  { %148 = vst.msk [vmem:[%s379_s5] sm:$0x3] %vm146_vm7, %v142_v39  ;;  %s243_s5 = scalar_lea.vmem %s221_s30, 16 }
  0x49   :  { %p244_p0 = scmp.ne.s32.totalorder %s221_s30, %s243_s5  ;;  %p249_p2 = scmp.lt.s32.totalorder %s247_s7, %s243_s5 }
  0x4b   :  { %p250_p3 = por %p249_p2, %p248_p1 }
  0x4d   :  { %p251_p4 = pnand %p250_p3, %p244_p0 }
  0xac   :  { %v195_v32 = vpop.xlane.xlu0 %194 }
  0xad   :  { %v196_v40 = vrot.slane %v195_v32, 4 }
  0xaf   :  { %v197_v41 = vadd.f32 %v196_v40, %v195_v32 }
  0xb1   :  { %v198_v26 = vrot.slane %v197_v41, 2 }
  0xb3   :  { %v199_v42 = vadd.f32 %v198_v26, %v197_v41 }
  0xb5   :  { %v200_v24 = vrot.slane %v199_v42, 1 }
  0xb7   :  { %v201_v37 = vadd.f32 %v200_v24, %v199_v42 }
  0xb9   :  { %231 = vpush %v201_v37 }
  0xea   :  { %s232_s28 = spop %231 }
  0xeb   :  { %v203_v43 = vstv %s232_s28 }
  0xec   :  { %v204_v44 = vadd.f32 %v203_v43, %v189_v31 }
  0xee   :  { %206 = vst.msk [vmem:[#allocation2] sm:$0x1] %vm27_vm6, %v204_v44 }
  0xf5   :  { %v210_v14 = vld [vmem:[#allocation2] sm:$0x1] }
  0xf6   :  { %211 = vst.msk [vmem:[#allocation3] sm:$0x1] %vm27_vm6, %v210_v14 }
  0xf7   :  { %254 = shalt.err (!%p251_p4)
}
  0xf8   :  { %s255_s10 = scalar_lea.hbm %s380_s6, 16 }
  0xf9   :  { %p256_p5 = scmp.ne.s32.totalorder %s380_s6, %s255_s10  ;;  %p259_p6 = scmp.lt.u32.totalorder %s255_s10, %s380_s6 }
  0xfb   :  { %p261_p7 = pnand %p259_p6, %p256_p5 }
  0xfd   :  { %264 = shalt.err (!%p261_p7)
}
  0xfe   :  { %223 = dma.vmem_to_hbm [thread:$0]  %s221_s30, 16, %s380_s6, [#allocation4]  }
  0xff   :  { %265 = dma.done.wait [#allocation4], 16  }
 0x100   :  { %266 = vsyncadd [#allocation4], 4294967280 }
 0x101   :  { %229 = vsyncpa [#allocation4], 1 }

</bundles_post_ra>
